<compile_context>
chip_gen: v7x
topology: tpu7x:2x2x1
jax: 0.10.0
libtpu: 0.0.40
codegen_flags: <defaults>
</compile_context>

<pallas_src>
import jax
import jax.numpy as jnp
from jax.experimental import pallas as pl
from jax.experimental.pallas import tpu as pltpu

# Small, module-consistent shapes (original: height=256, width=640, 3 channels).
HEIGHT = 16
WIDTH = 16
CHANNELS = 3
HIDDEN = 512
NUM_CATEGORIES = 10
OUT_PAD = 128                 # lane-dense padded logits width (multiple of 128)
BATCH = 2
BM = 128                      # batch-tile rows per grid step (MXU-friendly)
IN_FEATURES = HEIGHT * WIDTH * CHANNELS  # = width * height * 3

# NOTE: at the original 256x640x3 size (IN_FEATURES=491520), w1 (~1 GB f32) would
# require a K-tiled grid with an f32 VMEM accumulator sized for v7x's 64 MiB VMEM;
# at these test shapes everything fits resident in VMEM, so no K-tiling is needed.


def mlp_kernel(x_ref, w1_ref, b1_ref, w2_ref, b2_ref, w3_ref, b3_ref, o_ref):
    # Layer 1: Linear(IN_FEATURES, 512) + ReLU  (bf16 operands, f32 accumulation)
    h1 = jnp.dot(x_ref[...], w1_ref[...], preferred_element_type=jnp.float32)
    h1 = jnp.maximum(h1 + b1_ref[...], 0.0)
    # Layer 2: Linear(512, 512) + ReLU
    h2 = jnp.dot(h1.astype(jnp.bfloat16), w2_ref[...],
                 preferred_element_type=jnp.float32)
    h2 = jnp.maximum(h2 + b2_ref[...], 0.0)
    # Layer 3: Linear(512, OUT_PAD) (logits, padded lane-dense; no activation)
    logits = jnp.dot(h2.astype(jnp.bfloat16), w3_ref[...],
                     preferred_element_type=jnp.float32)
    o_ref[...] = logits + b3_ref[...]


def neural_network_forward(x_nchw, params):
    """Equivalent of NeuralNetwork.forward for NCHW input."""
    w1, b1, w2, b2, w3p, b3p = params
    b = x_nchw.shape[0]
    # nn.Flatten: (B, C, H, W) -> (B, C*H*W), row-major over (C, H, W)
    x_flat = x_nchw.reshape(b, -1).astype(jnp.bfloat16)

    # Pad batch up to a multiple of BM so the MXU sees full 128-row tiles and the
    # weights (constant block index) are fetched once and stay resident in VMEM.
    bp = pl.cdiv(b, BM) * BM
    if bp != b:
        x_flat = jnp.pad(x_flat, ((0, bp - b), (0, 0)))
    n_tiles = bp // BM

    out = pl.pallas_call(
        mlp_kernel,
        out_shape=jax.ShapeDtypeStruct((bp, OUT_PAD), jnp.float32),
        grid=(n_tiles,),
        in_specs=[
            pl.BlockSpec((BM, IN_FEATURES), lambda i: (i, 0)),      # x tile per step
            pl.BlockSpec((IN_FEATURES, HIDDEN), lambda i: (0, 0)),  # w1 (resident)
            pl.BlockSpec((1, HIDDEN), lambda i: (0, 0)),            # b1
            pl.BlockSpec((HIDDEN, HIDDEN), lambda i: (0, 0)),       # w2 (resident)
            pl.BlockSpec((1, HIDDEN), lambda i: (0, 0)),            # b2
            pl.BlockSpec((HIDDEN, OUT_PAD), lambda i: (0, 0)),      # w3 (resident)
            pl.BlockSpec((1, OUT_PAD), lambda i: (0, 0)),           # b3
        ],
        out_specs=pl.BlockSpec((BM, OUT_PAD), lambda i: (i, 0)),
        compiler_params=pltpu.CompilerParams(
            dimension_semantics=("parallel",)),
    )(x_flat, w1, b1, w2, b2, w3p, b3p)

    # Strip batch padding and the lane-dense logits padding.
    return out[:b, :NUM_CATEGORIES]


def init_params(key):
    """Deterministic parameter init (shapes from the module __init__).

    PyTorch nn.Linear stores weight as (out, in); we keep the math equivalent by
    generating (in, out) matrices directly (x @ W + b).  Weights are stored in
    bf16 (f32 accumulation happens on the MXU); biases stay f32.  The last layer
    is zero-padded from NUM_CATEGORIES to OUT_PAD columns for lane-dense stores."""
    k1, k2, k3, k4, k5, k6 = jax.random.split(key, 6)
    s1 = 1.0 / jnp.sqrt(IN_FEATURES)
    s2 = 1.0 / jnp.sqrt(HIDDEN)
    w1 = jax.random.uniform(k1, (IN_FEATURES, HIDDEN), jnp.float32, -s1, s1)
    b1 = jax.random.uniform(k2, (1, HIDDEN), jnp.float32, -s1, s1)
    w2 = jax.random.uniform(k3, (HIDDEN, HIDDEN), jnp.float32, -s2, s2)
    b2 = jax.random.uniform(k4, (1, HIDDEN), jnp.float32, -s2, s2)
    w3 = jax.random.uniform(k5, (HIDDEN, NUM_CATEGORIES), jnp.float32, -s2, s2)
    b3 = jax.random.uniform(k6, (1, NUM_CATEGORIES), jnp.float32, -s2, s2)

    w1b = w1.astype(jnp.bfloat16)
    w2b = w2.astype(jnp.bfloat16)
    w3p = jnp.zeros((HIDDEN, OUT_PAD), jnp.bfloat16).at[:, :NUM_CATEGORIES].set(
        w3.astype(jnp.bfloat16))
    b3p = jnp.zeros((1, OUT_PAD), jnp.float32).at[:, :NUM_CATEGORIES].set(b3)
    return (w1b, b1, w2b, b2, w3p, b3p)


if __name__ == "__main__":
    key = jax.random.PRNGKey(0)
    kx, kp = jax.random.split(key)
    # Input image batch, NCHW like PyTorch (original code unsqueezes a single
    # image to add the batch dim; we use batch=2 here).
    x = jax.random.normal(kx, (BATCH, CHANNELS, HEIGHT, WIDTH), jnp.float32)
    params = init_params(kp)

    logits = neural_network_forward(x, params)
    logits = jax.block_until_ready(logits)

    # Sanity check against a pure-JAX reference using the same bf16-rounded
    # operands (f32 math), so only MXU/accumulation-order noise remains.
    w1, b1, w2, b2, w3p, b3p = params
    xf = x.reshape(BATCH, -1).astype(jnp.bfloat16).astype(jnp.float32)
    ref = jnp.maximum(xf @ w1.astype(jnp.float32) + b1, 0.0)
    ref = jnp.maximum(
        ref.astype(jnp.bfloat16).astype(jnp.float32) @ w2.astype(jnp.float32) + b2,
        0.0)
    ref = ref.astype(jnp.bfloat16).astype(jnp.float32) @ w3p.astype(jnp.float32) + b3p
    ref = ref[:, :NUM_CATEGORIES]

    assert logits.shape == (BATCH, NUM_CATEGORIES)
    assert jnp.allclose(logits, ref, atol=2e-2, rtol=2e-2)

    print("KERNEL_OK")
</pallas_src>

<mosaic_0001>
module attributes {stable_mosaic.version = 11 : i64} {
  func.func @mlp_kernel(%arg0: i32, %arg1: memref<128x768xbf16, #tpu.memory_space<vmem>>, %arg2: memref<768x512xbf16, #tpu.memory_space<vmem>>, %arg3: memref<1x512xf32, #tpu.memory_space<vmem>>, %arg4: memref<512x512xbf16, #tpu.memory_space<vmem>>, %arg5: memref<1x512xf32, #tpu.memory_space<vmem>>, %arg6: memref<512x128xbf16, #tpu.memory_space<vmem>>, %arg7: memref<1x128xf32, #tpu.memory_space<vmem>>, %arg8: memref<128x128xf32, #tpu.memory_space<vmem>>) attributes {dimension_semantics = [#tpu.dimension_semantics<parallel>], iteration_bounds = array<i64: 1>, scalar_prefetch = 0 : i64, scratch_operands = 0 : i64, tpu.core_type = #tpu.core_type<tc>, window_params = [{transform_indices = @transform_0, window_bounds = array<i64: 128, 768>}, {pipeline_mode = #tpu.pipeline_mode<synchronous>, transform_indices = @transform_1, window_bounds = array<i64: 768, 512>}, {pipeline_mode = #tpu.pipeline_mode<synchronous>, transform_indices = @transform_2, window_bounds = array<i64: 1, 512>}, {pipeline_mode = #tpu.pipeline_mode<synchronous>, transform_indices = @transform_3, window_bounds = array<i64: 512, 512>}, {pipeline_mode = #tpu.pipeline_mode<synchronous>, transform_indices = @transform_4, window_bounds = array<i64: 1, 512>}, {pipeline_mode = #tpu.pipeline_mode<synchronous>, transform_indices = @transform_5, window_bounds = array<i64: 512, 128>}, {pipeline_mode = #tpu.pipeline_mode<synchronous>, transform_indices = @transform_6, window_bounds = array<i64: 1, 128>}, {transform_indices = @transform_7, window_bounds = array<i64: 128, 128>}]} {
    %c0 = arith.constant 0 : index
    %c0_0 = arith.constant 0 : index
    %0 = vector.load %arg1[%c0, %c0_0] : memref<128x768xbf16, #tpu.memory_space<vmem>>, vector<128x768xbf16>
    %c0_1 = arith.constant 0 : index
    %c0_2 = arith.constant 0 : index
    %1 = vector.load %arg2[%c0_1, %c0_2] : memref<768x512xbf16, #tpu.memory_space<vmem>>, vector<768x512xbf16>
    %cst = arith.constant dense<0.000000e+00> : vector<128x512xf32>
    %2 = tpu.matmul %0, %1, %cst {dimension_numbers = #tpu.dot_dimension_numbers<[1], [0], [0], [1], [0, 0, 1, 1], [], []>} : vector<128x768xbf16>, vector<768x512xbf16>, vector<128x512xf32> -> vector<128x512xf32>
    %c0_3 = arith.constant 0 : index
    %c0_4 = arith.constant 0 : index
    %3 = vector.load %arg3[%c0_3, %c0_4] : memref<1x512xf32, #tpu.memory_space<vmem>>, vector<1x512xf32>
    %4 = vector.broadcast %3 : vector<1x512xf32> to vector<128x512xf32>
    %5 = arith.addf %2, %4 : vector<128x512xf32>
    %cst_5 = arith.constant 0.000000e+00 : f32
    %6 = vector.broadcast %cst_5 : f32 to vector<128x512xf32>
    %7 = arith.maximumf %5, %6 : vector<128x512xf32>
    %8 = arith.truncf %7 : vector<128x512xf32> to vector<128x512xbf16>
    %c0_6 = arith.constant 0 : index
    %c0_7 = arith.constant 0 : index
    %9 = vector.load %arg4[%c0_6, %c0_7] : memref<512x512xbf16, #tpu.memory_space<vmem>>, vector<512x512xbf16>
    %cst_8 = arith.constant dense<0.000000e+00> : vector<128x512xf32>
    %10 = tpu.matmul %8, %9, %cst_8 {dimension_numbers = #tpu.dot_dimension_numbers<[1], [0], [0], [1], [0, 0, 1, 1], [], []>} : vector<128x512xbf16>, vector<512x512xbf16>, vector<128x512xf32> -> vector<128x512xf32>
    %c0_9 = arith.constant 0 : index
    %c0_10 = arith.constant 0 : index
    %11 = vector.load %arg5[%c0_9, %c0_10] : memref<1x512xf32, #tpu.memory_space<vmem>>, vector<1x512xf32>
    %12 = vector.broadcast %11 : vector<1x512xf32> to vector<128x512xf32>
    %13 = arith.addf %10, %12 : vector<128x512xf32>
    %cst_11 = arith.constant 0.000000e+00 : f32
    %14 = vector.broadcast %cst_11 : f32 to vector<128x512xf32>
    %15 = arith.maximumf %13, %14 : vector<128x512xf32>
    %16 = arith.truncf %15 : vector<128x512xf32> to vector<128x512xbf16>
    %c0_12 = arith.constant 0 : index
    %c0_13 = arith.constant 0 : index
    %17 = vector.load %arg6[%c0_12, %c0_13] : memref<512x128xbf16, #tpu.memory_space<vmem>>, vector<512x128xbf16>
    %cst_14 = arith.constant dense<0.000000e+00> : vector<128x128xf32>
    %18 = tpu.matmul %16, %17, %cst_14 {dimension_numbers = #tpu.dot_dimension_numbers<[1], [0], [0], [1], [0, 0, 1, 1], [], []>} : vector<128x512xbf16>, vector<512x128xbf16>, vector<128x128xf32> -> vector<128x128xf32>
    %c0_15 = arith.constant 0 : index
    %c0_16 = arith.constant 0 : index
    %19 = vector.load %arg7[%c0_15, %c0_16] : memref<1x128xf32, #tpu.memory_space<vmem>>, vector<1x128xf32>
    %20 = vector.broadcast %19 : vector<1x128xf32> to vector<128x128xf32>
    %21 = arith.addf %18, %20 : vector<128x128xf32>
    %c0_17 = arith.constant 0 : index
    %c0_18 = arith.constant 0 : index
    %22 = vector.load %arg8[%c0_17, %c0_18] : memref<128x128xf32, #tpu.memory_space<vmem>>, vector<128x128xf32>
    tpu.vector_store %arg8[%c0_17, %c0_18], %21 {strides = array<i32>} : memref<128x128xf32, #tpu.memory_space<vmem>>, vector<128x128xf32>,
    return
  }
  func.func @transform_0(%arg0: i32) -> (i32, i32) {
    %c0_i32 = arith.constant 0 : i32
    %c0_i32_0 = arith.constant 0 : i32
    return %arg0, %c0_i32 : i32, i32
  }
  func.func @transform_1(%arg0: i32) -> (i32, i32) {
    %c0_i32 = arith.constant 0 : i32
    %c0_i32_0 = arith.constant 0 : i32
    %c0_i32_1 = arith.constant 0 : i32
    return %c0_i32, %c0_i32_0 : i32, i32
  }
  func.func @transform_2(%arg0: i32) -> (i32, i32) {
    %c0_i32 = arith.constant 0 : i32
    %c0_i32_0 = arith.constant 0 : i32
    %c0_i32_1 = arith.constant 0 : i32
    return %c0_i32, %c0_i32_0 : i32, i32
  }
  func.func @transform_3(%arg0: i32) -> (i32, i32) {
    %c0_i32 = arith.constant 0 : i32
    %c0_i32_0 = arith.constant 0 : i32
    %c0_i32_1 = arith.constant 0 : i32
    return %c0_i32, %c0_i32_0 : i32, i32
  }
  func.func @transform_4(%arg0: i32) -> (i32, i32) {
    %c0_i32 = arith.constant 0 : i32
    %c0_i32_0 = arith.constant 0 : i32
    %c0_i32_1 = arith.constant 0 : i32
    return %c0_i32, %c0_i32_0 : i32, i32
  }
  func.func @transform_5(%arg0: i32) -> (i32, i32) {
    %c0_i32 = arith.constant 0 : i32
    %c0_i32_0 = arith.constant 0 : i32
    %c0_i32_1 = arith.constant 0 : i32
    return %c0_i32, %c0_i32_0 : i32, i32
  }
  func.func @transform_6(%arg0: i32) -> (i32, i32) {
    %c0_i32 = arith.constant 0 : i32
    %c0_i32_0 = arith.constant 0 : i32
    %c0_i32_1 = arith.constant 0 : i32
    return %c0_i32, %c0_i32_0 : i32, i32
  }
  func.func @transform_7(%arg0: i32) -> (i32, i32) {
    %c0_i32 = arith.constant 0 : i32
    %c0_i32_0 = arith.constant 0 : i32
    return %arg0, %c0_i32 : i32, i32
  }
}

</mosaic_0001>

<bundles_post_ra>
// kernel: tpu_custom_call.1
= control target key start
LH: loop header
LB: loop body
LE: loop exit
PB: predicated region body
PF: predicated region fallthrough
CT: control target
= control target key end

     0   :  { %12 = vsyncpa [#allocation3], 0  ;;  %s6096_s0 = inlined_call_operand.hbm [shape: bf16[128,768], index: 0, kind: input, shape index: {}]   ;;  %s6097_s1 = inlined_call_operand.hbm [shape: bf16[768,512], index: 1, kind: input, shape index: {}]   ;;  %s6098_s2 = inlined_call_operand.vmem [shape: f32[1,512], index: 2, kind: input, shape index: {}]   ;;  %s6099_s3 = inlined_call_operand.hbm [shape: bf16[512,512], index: 3, kind: input, shape index: {}]   ;;  %s6100_s4 = inlined_call_operand.vmem [shape: f32[1,512], index: 4, kind: input, shape index: {}]   ;;  %s6101_s5 = inlined_call_operand.hbm [shape: bf16[512,128], index: 5, kind: input, shape index: {}]   ;;  %s6102_s6 = inlined_call_operand.vmem [shape: f32[1,128], index: 6, kind: input, shape index: {}]   ;;  %s6103_s7 = inlined_call_operand.hbm [shape: f32[128,128], index: 7, kind: output, shape index: {}]  }
   0x1   :  { %13 = vsyncpa [#allocation6], 0 }
   0x2   :  { %14 = vsyncpa [#allocation9], 0 }
   0x3   :  { %15 = vsyncpa [#allocation4], 0  ;;  %s5713_s24 = smov [#allocation5]   ;;  %s5595_s28 = scalar_lea.hbm %s6097_s1, 24576 }
   0x4   :  { %s33_s25 = sshll.u32 %s5713_s24, 4  ;;  %p5596_p0 = scmp.ne.s32.totalorder %s6097_s1, %s5595_s28  ;;  %s34_s25 = int_to_ptr.vmem [resolvable:$true] %s33_s25 }
   0x5   :  { %p5599_p1 = scmp.lt.u32.totalorder %s5595_s28, %s6097_s1 }
   0x7   :  { %p5601_p2 = pnand %p5599_p1, %p5596_p0 }
   0x9   :  { %5604 = shalt.err (!%p5601_p2)
}
   0xa   :  { %s5605_s10 = scalar_lea.vmem %s34_s25, 24576  ;;  %p5610_p4 = scmp.lt.s32.totalorder %s34_s25, %s34_s25 }
   0xb   :  { %p5606_p3 = scmp.ne.s32.totalorder %s34_s25, %s5605_s10  ;;  %p5611_p5 = scmp.lt.s32.totalorder %s5605_s10, %s5605_s10 }
   0xd   :  { %p5612_p6 = por %p5611_p5, %p5610_p4 }
   0xf   :  { %p5613_p7 = pnand %p5612_p6, %p5606_p3 }
  0x11   :  { %5616 = shalt.err (!%p5613_p7)
}
  0x12   :  { %s5714_s11 = smov 256   ;;  %s5715_s12 = smov 16  }
  0x13   :  { %39 = dma.hbm_to_vmem [thread:$0]  %s6097_s1, 24576, %s34_s25, [#allocation6], %s5714_s11, %s5714_s11, %s5715_s12  }
  0x14   :  { %s5716_s15 = smov [#allocation2]   ;;  %s5617_s19 = scalar_lea.hbm %s6096_s0, 6144 }
  0x15   :  { %s21_s16 = sshll.u32 %s5716_s15, 4  ;;  %p5618_p8 = scmp.ne.s32.totalorder %s6096_s0, %s5617_s19  ;;  %s22_s16 = int_to_ptr.vmem [resolvable:$true] %s21_s16 }
  0x16   :  { %p5621_p9 = scmp.lt.u32.totalorder %s5617_s19, %s6096_s0 }
  0x18   :  { %p5623_p10 = pnand %p5621_p9, %p5618_p8 }
  0x1a   :  { %5626 = shalt.err (!%p5623_p10)
}
  0x1b   :  { %s5627_s24 = scalar_lea.vmem %s22_s16, 6144  ;;  %p5632_p12 = scmp.lt.s32.totalorder %s22_s16, %s22_s16 }
  0x1c   :  { %p5628_p11 = scmp.ne.s32.totalorder %s22_s16, %s5627_s24  ;;  %p5633_p13 = scmp.lt.s32.totalorder %s5627_s24, %s5627_s24 }
  0x1e   :  { %p5634_p0 = por %p5633_p13, %p5632_p12 }
  0x20   :  { %p5635_p1 = pnand %p5634_p0, %p5628_p11 }
  0x22   :  { %5638 = shalt.err (!%p5635_p1)
}
  0x23   :  { %s5717_s1 = smov 384   ;;  %s5718_s25 = smov 24  }
  0x24   :  { %27 = dma.hbm_to_vmem [thread:$0]  %s6096_s0, 6144, %s22_s16, [#allocation3], %s5717_s1, %s5717_s1, %s5718_s25  }
  0x25   :  { %s5719_s28 = smov [#allocation7]   ;;  %s5720_s30 = smov [#allocation8]  }
  0x26   :  { %s47_s29 = sshll.u32 %s5719_s28, 4  ;;  %s61_s8 = sshll.u32 %s5720_s30, 4  ;;  %s48_s29 = int_to_ptr.vmem [resolvable:$true] %s47_s29  ;;  %s5793_s8 = int_to_ptr.vmem [resolvable:$true] %s61_s8 }
  0x27   :  { %s5639_s13 = scalar_lea.hbm %s6099_s3, 16384 }
  0x28   :  { %p5640_p2 = scmp.ne.s32.totalorder %s6099_s3, %s5639_s13  ;;  %p5643_p3 = scmp.lt.u32.totalorder %s5639_s13, %s6099_s3 }
  0x2a   :  { %p5645_p4 = pnand %p5643_p3, %p5640_p2 }
  0x2c   :  { %5648 = shalt.err (!%p5645_p4)
}
  0x2d   :  { %s5649_s0 = scalar_lea.vmem %s48_s29, 16384  ;;  %p5654_p6 = scmp.lt.s32.totalorder %s48_s29, %s48_s29 }
  0x2e   :  { %p5650_p5 = scmp.ne.s32.totalorder %s48_s29, %s5649_s0  ;;  %p5655_p7 = scmp.lt.s32.totalorder %s5649_s0, %s5649_s0 }
  0x30   :  { %p5656_p8 = por %p5655_p7, %p5654_p6 }
  0x32   :  { %p5657_p9 = pnand %p5656_p8, %p5650_p5 }
  0x34   :  { %5660 = shalt.err (!%p5657_p9)
}
  0x35   :  { %53 = dma.hbm_to_vmem [thread:$0]  %s6099_s3, 16384, %s48_s29, [#allocation6], %s5714_s11, %s5714_s11, %s5715_s12  }
  0x36   :  { %s5661_s22 = scalar_lea.hbm %s6101_s5, 4096 }
  0x37   :  { %p5662_p10 = scmp.ne.s32.totalorder %s6101_s5, %s5661_s22  ;;  %p5665_p11 = scmp.lt.u32.totalorder %s5661_s22, %s6101_s5 }
  0x39   :  { %p5667_p12 = pnand %p5665_p11, %p5662_p10 }
  0x3b   :  { %5670 = shalt.err (!%p5667_p12)
}
  0x3c   :  { %s5671_s26 = scalar_lea.vmem %s5793_s8, 4096  ;;  %p5676_p0 = scmp.lt.s32.totalorder %s5793_s8, %s5793_s8 }
  0x3d   :  { %p5672_p13 = scmp.ne.s32.totalorder %s5793_s8, %s5671_s26  ;;  %p5677_p1 = scmp.lt.s32.totalorder %s5671_s26, %s5671_s26 }
  0x3f   :  { %p5678_p2 = por %p5677_p1, %p5676_p0 }
  0x41   :  { %p5679_p3 = pnand %p5678_p2, %p5672_p13 }
  0x43   :  { %5682 = shalt.err (!%p5679_p3)
}
  0x44   :  { %s5721_s3 = smov 64   ;;  %s5722_s11 = smov 4  }
  0x45   :  { %67 = dma.hbm_to_vmem [thread:$0]  %s6101_s5, 4096, %s5793_s8, [#allocation9], %s5721_s3, %s5721_s3, %s5722_s11  }
  0x46   :  { %5705 = dma.done.wait [#allocation3], 6144  }
  0x47   :  { %5706 = vsyncadd [#allocation3], 4294961152 }
  0x48   :  { %5707 = dma.done.wait [#allocation6], 40960  }
  0x49   :  { %5708 = vsyncadd [#allocation6], 4294926336 }
  0x4a   :  { %5709 = dma.done.wait [#allocation9], 4096  }
  0x4b   :  { %5710 = vsyncadd [#allocation9], 4294963200  ;;  %v5011_v0 = vld [vmem:[#allocation5 + $0x4] ss:$16 sps:$4 sm:$0xff]   ;;  %v5013_v1 = vld [vmem:[#allocation5 + $0xc] ss:$16 sps:$4 sm:$0xff]  }
  0x4c   :  { %1545 = vmatprep.subr.bf16.mxu0 %v5011_v0  ;;  %v5015_v2 = vld [vmem:[#allocation5] ss:$16 sps:$4 sm:$0xff]   ;;  %v5016_v3 = vld [vmem:[#allocation5 + $0x8] ss:$16 sps:$4 sm:$0xff]   ;;  %1884 = vmatprep.subr.bf16.mxu1 %v5013_v1  ;;  %v5017_v4 = vld [vmem:[#allocation5 + $0x24] ss:$16 sps:$4 sm:$0xff]  }
  0x4d   :  { %1546 = vmatpush1.bf16.msra.mxu0 %v5015_v2  ;;  %1885 = vmatpush1.bf16.msra.mxu1 %v5016_v3  ;;  %v5019_v5 = vld [vmem:[#allocation5 + $0x2c] ss:$16 sps:$4 sm:$0xff]   ;;  %v5021_v6 = vld [vmem:[#allocation5 + $0x20] ss:$16 sps:$4 sm:$0xff]   ;;  %v5022_v7 = vld [vmem:[#allocation5 + $0x28] ss:$16 sps:$4 sm:$0xff]  }
  0x4e   :  { %1547 = vmatprep.subr.bf16.mxu0 %v5017_v4  ;;  %1886 = vmatprep.subr.bf16.mxu1 %v5019_v5  ;;  %v5023_v8 = vld [vmem:[#allocation5 + $0x44] ss:$16 sps:$4 sm:$0xff]   ;;  %v5025_v9 = vld [vmem:[#allocation5 + $0x4c] ss:$16 sps:$4 sm:$0xff]   ;;  %v5027_v10 = vld [vmem:[#allocation5 + $0x40] ss:$16 sps:$4 sm:$0xff]  }
  0x4f   :  { %v5028_v11 = vld [vmem:[#allocation5 + $0x48] ss:$16 sps:$4 sm:$0xff]   ;;  %v5029_v12 = vld [vmem:[#allocation5 + $0x64] ss:$16 sps:$4 sm:$0xff]   ;;  %v5031_v13 = vld [vmem:[#allocation5 + $0x6c] ss:$16 sps:$4 sm:$0xff]  }
  0x50   :  { %v5033_v14 = vld [vmem:[#allocation5 + $0x60] ss:$16 sps:$4 sm:$0xff]   ;;  %v5034_v15 = vld [vmem:[#allocation5 + $0x68] ss:$16 sps:$4 sm:$0xff]   ;;  %v5035_v16 = vld [vmem:[#allocation5 + $0x84] ss:$16 sps:$4 sm:$0xff]  }
  0x51   :  { %1548 = vmatpush1.bf16.msra.mxu0 %v5021_v6  ;;  %1887 = vmatpush1.bf16.msra.mxu1 %v5022_v7  ;;  %v5037_v17 = vld [vmem:[#allocation5 + $0x8c] ss:$16 sps:$4 sm:$0xff]   ;;  %v5039_v18 = vld [vmem:[#allocation5 + $0x80] ss:$16 sps:$4 sm:$0xff]   ;;  %v5040_v19 = vld [vmem:[#allocation5 + $0x88] ss:$16 sps:$4 sm:$0xff]  }
  0x52   :  { %1549 = vmatprep.subr.bf16.mxu0 %v5023_v8  ;;  %1888 = vmatprep.subr.bf16.mxu1 %v5025_v9  ;;  %v5041_v20 = vld [vmem:[#allocation5 + $0xa4] ss:$16 sps:$4 sm:$0xff]   ;;  %v5043_v21 = vld [vmem:[#allocation5 + $0xac] ss:$16 sps:$4 sm:$0xff]   ;;  %v5045_v22 = vld [vmem:[#allocation5 + $0xa0] ss:$16 sps:$4 sm:$0xff]  }
  0x53   :  { %v5046_v23 = vld [vmem:[#allocation5 + $0xa8] ss:$16 sps:$4 sm:$0xff]   ;;  %v5047_v24 = vld [vmem:[#allocation5 + $0xc4] ss:$16 sps:$4 sm:$0xff]   ;;  %v5049_v25 = vld [vmem:[#allocation5 + $0xcc] ss:$16 sps:$4 sm:$0xff]  }
  0x54   :  { %v5051_v26 = vld [vmem:[#allocation5 + $0xc0] ss:$16 sps:$4 sm:$0xff]   ;;  %v5052_v27 = vld [vmem:[#allocation5 + $0xc8] ss:$16 sps:$4 sm:$0xff]   ;;  %v5053_v28 = vld [vmem:[#allocation5 + $0xe4] ss:$16 sps:$4 sm:$0xff]  }
  0x55   :  { %1550 = vmatpush1.bf16.msra.mxu0 %v5027_v10  ;;  %1889 = vmatpush1.bf16.msra.mxu1 %v5028_v11  ;;  %v5055_v29 = vld [vmem:[#allocation5 + $0xec] ss:$16 sps:$4 sm:$0xff]   ;;  %v5057_v30 = vld [vmem:[#allocation5 + $0xe0] ss:$16 sps:$4 sm:$0xff]   ;;  %v5058_v31 = vld [vmem:[#allocation5 + $0xe8] ss:$16 sps:$4 sm:$0xff]  }
  0x56   :  { %1551 = vmatprep.subr.bf16.mxu0 %v5029_v12  ;;  %1890 = vmatprep.subr.bf16.mxu1 %v5031_v13  ;;  %v5059_v32 = vld [vmem:[#allocation5 + $0x104] ss:$16 sps:$4 sm:$0xff]   ;;  %v5061_v33 = vld [vmem:[#allocation5 + $0x10c] ss:$16 sps:$4 sm:$0xff]   ;;  %v5063_v34 = vld [vmem:[#allocation5 + $0x100] ss:$16 sps:$4 sm:$0xff]  }
  0x57   :  { %v5064_v35 = vld [vmem:[#allocation5 + $0x108] ss:$16 sps:$4 sm:$0xff]   ;;  %v5065_v36 = vld [vmem:[#allocation5 + $0x124] ss:$16 sps:$4 sm:$0xff]   ;;  %v5067_v37 = vld [vmem:[#allocation5 + $0x12c] ss:$16 sps:$4 sm:$0xff]  }
  0x58   :  { %v5069_v38 = vld [vmem:[#allocation5 + $0x120] ss:$16 sps:$4 sm:$0xff]   ;;  %v5070_v39 = vld [vmem:[#allocation5 + $0x128] ss:$16 sps:$4 sm:$0xff]   ;;  %v5071_v40 = vld [vmem:[#allocation5 + $0x144] ss:$16 sps:$4 sm:$0xff]  }
  0x59   :  { %1552 = vmatpush1.bf16.msra.mxu0 %v5033_v14  ;;  %1891 = vmatpush1.bf16.msra.mxu1 %v5034_v15  ;;  %v5073_v41 = vld [vmem:[#allocation5 + $0x14c] ss:$16 sps:$4 sm:$0xff]   ;;  %v5075_v42 = vld [vmem:[#allocation5 + $0x140] ss:$16 sps:$4 sm:$0xff]   ;;  %v5076_v43 = vld [vmem:[#allocation5 + $0x148] ss:$16 sps:$4 sm:$0xff]  }
  0x5a   :  { %1553 = vmatprep.subr.bf16.mxu0 %v5035_v16  ;;  %1892 = vmatprep.subr.bf16.mxu1 %v5037_v17  ;;  %v5077_v44 = vld [vmem:[#allocation5 + $0x164] ss:$16 sps:$4 sm:$0xff]   ;;  %v5079_v45 = vld [vmem:[#allocation5 + $0x16c] ss:$16 sps:$4 sm:$0xff]   ;;  %v5081_v46 = vld [vmem:[#allocation5 + $0x160] ss:$16 sps:$4 sm:$0xff]  }
  0x5b   :  { %v5082_v47 = vld [vmem:[#allocation5 + $0x168] ss:$16 sps:$4 sm:$0xff]   ;;  %v5109_v48 = vld [vmem:[#allocation2 + $0x4] ss:$24 sps:$4 sm:$0xff]   ;;  %v5087_v51 = vld [vmem:[#allocation5 + $0x180] ss:$16 sps:$4 sm:$0xff]  }
  0x5c   :  { %v5083_v49 = vld [vmem:[#allocation5 + $0x184] ss:$16 sps:$4 sm:$0xff]   ;;  %v5085_v50 = vld [vmem:[#allocation5 + $0x18c] ss:$16 sps:$4 sm:$0xff]   ;;  %1577 = vmatprep.mubr.bf16.mxu0 %v5109_v48  ;;  %1916 = vmatprep.mubr.bf16.mxu1 %v5109_v48  ;;  %v5088_v52 = vld [vmem:[#allocation5 + $0x188] ss:$16 sps:$4 sm:$0xff]  }
  0x5d   :  { %1554 = vmatpush1.bf16.msra.mxu0 %v5039_v18  ;;  %1893 = vmatpush1.bf16.msra.mxu1 %v5040_v19  ;;  %v5089_v53 = vld [vmem:[#allocation5 + $0x1a4] ss:$16 sps:$4 sm:$0xff]   ;;  %v5091_v54 = vld [vmem:[#allocation5 + $0x1ac] ss:$16 sps:$4 sm:$0xff]   ;;  %v5093_v55 = vld [vmem:[#allocation5 + $0x1a0] ss:$16 sps:$4 sm:$0xff]  }
  0x5e   :  { %1555 = vmatprep.subr.bf16.mxu0 %v5041_v20  ;;  %1894 = vmatprep.subr.bf16.mxu1 %v5043_v21  ;;  %v5094_v56 = vld [vmem:[#allocation5 + $0x1a8] ss:$16 sps:$4 sm:$0xff]   ;;  %v5095_v57 = vld [vmem:[#allocation5 + $0x1c4] ss:$16 sps:$4 sm:$0xff]   ;;  %v5097_v58 = vld [vmem:[#allocation5 + $0x1cc] ss:$16 sps:$4 sm:$0xff]  }
  0x5f   :  { %v5099_v59 = vld [vmem:[#allocation5 + $0x1c0] ss:$16 sps:$4 sm:$0xff]   ;;  %v5100_v60 = vld [vmem:[#allocation5 + $0x1c8] ss:$16 sps:$4 sm:$0xff]   ;;  %v5101_v61 = vld [vmem:[#allocation5 + $0x1e4] ss:$16 sps:$4 sm:$0xff]  }
  0x60   :  { %v5103_v62 = vld [vmem:[#allocation5 + $0x1ec] ss:$16 sps:$4 sm:$0xff]   ;;  %v5105_v63 = vld [vmem:[#allocation5 + $0x1e0] ss:$16 sps:$4 sm:$0xff]   ;;  %v5106_v0 = vld [vmem:[#allocation5 + $0x1e8] ss:$16 sps:$4 sm:$0xff]  }
  0x61   :  { %1556 = vmatpush1.bf16.msra.mxu0 %v5045_v22  ;;  %1895 = vmatpush1.bf16.msra.mxu1 %v5046_v23  ;;  %v5112_v1 = vld [vmem:[#allocation5 + $0x204] ss:$16 sps:$4 sm:$0xff]   ;;  %v5115_v2 = vld [vmem:[#allocation5 + $0x20c] ss:$16 sps:$4 sm:$0xff]   ;;  %v5107_v3 = vld [vmem:[#allocation2] ss:$24 sps:$4 sm:$0xff]  }
  0x62   :  { %1557 = vmatprep.subr.bf16.mxu0 %v5047_v24  ;;  %1896 = vmatprep.subr.bf16.mxu1 %v5049_v25  ;;  %v5110_v4 = vld [vmem:[#allocation5 + $0x200] ss:$16 sps:$4 sm:$0xff]   ;;  %v5113_v5 = vld [vmem:[#allocation5 + $0x208] ss:$16 sps:$4 sm:$0xff]   ;;  %v5118_v6 = vld [vmem:[#allocation5 + $0x224] ss:$16 sps:$4 sm:$0xff]  }
  0x63   :  { %v5121_v7 = vld [vmem:[#allocation5 + $0x22c] ss:$16 sps:$4 sm:$0xff]   ;;  %v5116_v9 = vld [vmem:[#allocation5 + $0x220] ss:$16 sps:$4 sm:$0xff]   ;;  %v5119_v10 = vld [vmem:[#allocation5 + $0x228] ss:$16 sps:$4 sm:$0xff]  }
  0x64   :  { %v5122_v8 = vld [vmem:[#allocation2 + $0x34] ss:$24 sps:$4 sm:$0xff]   ;;  %v5124_v13 = vld [vmem:[#allocation2 + $0x30] ss:$24 sps:$4 sm:$0xff]   ;;  %v5137_v18 = vld [vmem:[#allocation2 + $0x64] ss:$24 sps:$4 sm:$0xff]  }
  0x65   :  { %1558 = vmatpush1.bf16.msra.mxu0 %v5051_v26  ;;  %1897 = vmatpush1.bf16.msra.mxu1 %v5052_v27  ;;  %v5127_v11 = vld [vmem:[#allocation5 + $0x244] ss:$16 sps:$4 sm:$0xff]   ;;  %v5130_v12 = vld [vmem:[#allocation5 + $0x24c] ss:$16 sps:$4 sm:$0xff]   ;;  %v5125_v14 = vld [vmem:[#allocation5 + $0x240] ss:$16 sps:$4 sm:$0xff]  }
  0x66   :  { %1559 = vmatprep.subr.bf16.mxu0 %v5053_v28  ;;  %1898 = vmatprep.subr.bf16.mxu1 %v5055_v29  ;;  %v5128_v15 = vld [vmem:[#allocation5 + $0x248] ss:$16 sps:$4 sm:$0xff]   ;;  %v5133_v16 = vld [vmem:[#allocation5 + $0x264] ss:$16 sps:$4 sm:$0xff]   ;;  %v5136_v17 = vld [vmem:[#allocation5 + $0x26c] ss:$16 sps:$4 sm:$0xff]  }
  0x67   :  { %v5131_v19 = vld [vmem:[#allocation5 + $0x260] ss:$16 sps:$4 sm:$0xff]   ;;  %v5134_v20 = vld [vmem:[#allocation5 + $0x268] ss:$16 sps:$4 sm:$0xff]   ;;  %v5142_v21 = vld [vmem:[#allocation5 + $0x284] ss:$16 sps:$4 sm:$0xff]  }
  0x68   :  { %v5145_v22 = vld [vmem:[#allocation5 + $0x28c] ss:$16 sps:$4 sm:$0xff]   ;;  %v5139_v23 = vld [vmem:[#allocation2 + $0x60] ss:$24 sps:$4 sm:$0xff]   ;;  %v5148_v26 = vld [vmem:[#allocation5 + $0x2a4] ss:$16 sps:$4 sm:$0xff]  }
  0x69   :  { %1560 = vmatpush1.bf16.msra.mxu0 %v5057_v30  ;;  %1899 = vmatpush1.bf16.msra.mxu1 %v5058_v31  ;;  %v5140_v24 = vld [vmem:[#allocation5 + $0x280] ss:$16 sps:$4 sm:$0xff]   ;;  %v5143_v25 = vld [vmem:[#allocation5 + $0x288] ss:$16 sps:$4 sm:$0xff]   ;;  %v5151_v27 = vld [vmem:[#allocation5 + $0x2ac] ss:$16 sps:$4 sm:$0xff]  }
  0x6a   :  { %1561 = vmatprep.subr.bf16.mxu0 %v5059_v32  ;;  %1900 = vmatprep.subr.bf16.mxu1 %v5061_v33  ;;  %v5152_v28 = vld [vmem:[#allocation2 + $0x94] ss:$24 sps:$4 sm:$0xff]   ;;  %v5146_v29 = vld [vmem:[#allocation5 + $0x2a0] ss:$16 sps:$4 sm:$0xff]   ;;  %v5149_v30 = vld [vmem:[#allocation5 + $0x2a8] ss:$16 sps:$4 sm:$0xff]  }
  0x6b   :  { %v5157_v31 = vld [vmem:[#allocation5 + $0x2c4] ss:$16 sps:$4 sm:$0xff]   ;;  %v5160_v32 = vld [vmem:[#allocation5 + $0x2cc] ss:$16 sps:$4 sm:$0xff]   ;;  %v5154_v33 = vld [vmem:[#allocation2 + $0x90] ss:$24 sps:$4 sm:$0xff]  }
  0x6c   :  { %v5182_v48 = vld [vmem:[#allocation2 + $0xf4] ss:$24 sps:$4 sm:$0xff]  }
  0x6d   :  { %1562 = vmatpush1.bf16.msra.mxu0 %v5063_v34  ;;  %1901 = vmatpush1.bf16.msra.mxu1 %v5064_v35  ;;  %v5155_v34 = vld [vmem:[#allocation5 + $0x2c0] ss:$16 sps:$4 sm:$0xff]   ;;  %v5158_v35 = vld [vmem:[#allocation5 + $0x2c8] ss:$16 sps:$4 sm:$0xff]  }
  0x6e   :  { %1563 = vmatprep.subr.bf16.mxu0 %v5065_v36  ;;  %1902 = vmatprep.subr.bf16.mxu1 %v5067_v37  ;;  %v5163_v36 = vld [vmem:[#allocation5 + $0x2e4] ss:$16 sps:$4 sm:$0xff]   ;;  %v5166_v37 = vld [vmem:[#allocation5 + $0x2ec] ss:$16 sps:$4 sm:$0xff]  }
  0x71   :  { %1564 = vmatpush1.bf16.msra.mxu0 %v5069_v38  ;;  %1903 = vmatpush1.bf16.msra.mxu1 %v5070_v39  ;;  %v5167_v38 = vld [vmem:[#allocation2 + $0xc4] ss:$24 sps:$4 sm:$0xff]   ;;  %v5161_v39 = vld [vmem:[#allocation5 + $0x2e0] ss:$16 sps:$4 sm:$0xff]  }
  0x72   :  { %1565 = vmatprep.subr.bf16.mxu0 %v5071_v40  ;;  %1904 = vmatprep.subr.bf16.mxu1 %v5073_v41  ;;  %v5164_v40 = vld [vmem:[#allocation5 + $0x2e8] ss:$16 sps:$4 sm:$0xff]   ;;  %v5172_v41 = vld [vmem:[#allocation5 + $0x304] ss:$16 sps:$4 sm:$0xff]  }
  0x75   :  { %1566 = vmatpush1.bf16.msra.mxu0 %v5075_v42  ;;  %1905 = vmatpush1.bf16.msra.mxu1 %v5076_v43  ;;  %v5175_v42 = vld [vmem:[#allocation5 + $0x30c] ss:$16 sps:$4 sm:$0xff]   ;;  %v5169_v43 = vld [vmem:[#allocation2 + $0xc0] ss:$24 sps:$4 sm:$0xff]  }
  0x76   :  { %1567 = vmatprep.subr.bf16.mxu0 %v5077_v44  ;;  %1906 = vmatprep.subr.bf16.mxu1 %v5079_v45  ;;  %v5170_v44 = vld [vmem:[#allocation5 + $0x300] ss:$16 sps:$4 sm:$0xff]   ;;  %v5173_v45 = vld [vmem:[#allocation5 + $0x308] ss:$16 sps:$4 sm:$0xff]  }
  0x79   :  { %1568 = vmatpush1.bf16.msra.mxu0 %v5081_v46  ;;  %1907 = vmatpush1.bf16.msra.mxu1 %v5082_v47  ;;  %v5178_v46 = vld [vmem:[#allocation5 + $0x324] ss:$16 sps:$4 sm:$0xff]   ;;  %v5181_v47 = vld [vmem:[#allocation5 + $0x32c] ss:$16 sps:$4 sm:$0xff]  }
  0x7a   :  { %1569 = vmatprep.subr.bf16.mxu0 %v5083_v49  ;;  %1908 = vmatprep.subr.bf16.mxu1 %v5085_v50  ;;  %v5176_v49 = vld [vmem:[#allocation5 + $0x320] ss:$16 sps:$4 sm:$0xff]   ;;  %v5179_v50 = vld [vmem:[#allocation5 + $0x328] ss:$16 sps:$4 sm:$0xff]  }
  0x7d   :  { %1570 = vmatpush1.bf16.msra.mxu0 %v5087_v51  ;;  %1909 = vmatpush1.bf16.msra.mxu1 %v5088_v52  ;;  %v5187_v51 = vld [vmem:[#allocation5 + $0x344] ss:$16 sps:$4 sm:$0xff]   ;;  %v5190_v52 = vld [vmem:[#allocation5 + $0x34c] ss:$16 sps:$4 sm:$0xff]  }
  0x7e   :  { %1571 = vmatprep.subr.bf16.mxu0 %v5089_v53  ;;  %1910 = vmatprep.subr.bf16.mxu1 %v5091_v54  ;;  %v5184_v53 = vld [vmem:[#allocation2 + $0xf0] ss:$24 sps:$4 sm:$0xff]  }
  0x7f   :  { %v5185_v54 = vld [vmem:[#allocation5 + $0x340] ss:$16 sps:$4 sm:$0xff]  }
  0x81   :  { %1572 = vmatpush1.bf16.msra.mxu0 %v5093_v55  ;;  %1911 = vmatpush1.bf16.msra.mxu1 %v5094_v56  ;;  %v5188_v55 = vld [vmem:[#allocation5 + $0x348] ss:$16 sps:$4 sm:$0xff]   ;;  %v5193_v56 = vld [vmem:[#allocation5 + $0x364] ss:$16 sps:$4 sm:$0xff]  }
  0x82   :  { %1573 = vmatprep.subr.bf16.mxu0 %v5095_v57  ;;  %1912 = vmatprep.subr.bf16.mxu1 %v5097_v58  ;;  %v5196_v57 = vld [vmem:[#allocation5 + $0x36c] ss:$16 sps:$4 sm:$0xff]  }
  0x83   :  { %v5197_v58 = vld [vmem:[#allocation2 + $0x124] ss:$24 sps:$4 sm:$0xff]  }
  0x85   :  { %1574 = vmatpush1.bf16.msra.mxu0 %v5099_v59  ;;  %1913 = vmatpush1.bf16.msra.mxu1 %v5100_v60  ;;  %v5191_v59 = vld [vmem:[#allocation5 + $0x360] ss:$16 sps:$4 sm:$0xff]   ;;  %v5194_v60 = vld [vmem:[#allocation5 + $0x368] ss:$16 sps:$4 sm:$0xff]  }
  0x86   :  { %1575 = vmatprep.subr.bf16.mxu0 %v5101_v61  ;;  %1914 = vmatprep.subr.bf16.mxu1 %v5103_v62  ;;  %v5202_v61 = vld [vmem:[#allocation5 + $0x384] ss:$16 sps:$4 sm:$0xff]   ;;  %v5205_v62 = vld [vmem:[#allocation5 + $0x38c] ss:$16 sps:$4 sm:$0xff]  }
  0x89   :  { %1576 = vmatpush1.bf16.msra.mxu0 %v5105_v63  ;;  %1915 = vmatpush1.bf16.msra.mxu1 %v5106_v0  ;;  %v5199_v63 = vld [vmem:[#allocation2 + $0x120] ss:$24 sps:$4 sm:$0xff]  }
  0x8a   :  { %1658 = vmatprep.subr.bf16.mxu0 %v5112_v1  ;;  %1997 = vmatprep.subr.bf16.mxu1 %v5115_v2  ;;  %v5200_v0 = vld [vmem:[#allocation5 + $0x380] ss:$16 sps:$4 sm:$0xff]   ;;  %v5203_v1 = vld [vmem:[#allocation5 + $0x388] ss:$16 sps:$4 sm:$0xff]   ;;  %v5208_v2 = vld [vmem:[#allocation5 + $0x3a4] ss:$16 sps:$4 sm:$0xff]  }
  0x8c   :  { %1578 = vmatmul.mubr.bf16.vlgmr.msra.gmra.mrb[0].mxu0 %v5107_v3  ;;  %1917 = vmatmul.mubr.bf16.vlgmr.msra.gmra.mrb[0].mxu1 %v5107_v3  ;;  %v5211_v3 = vld [vmem:[#allocation5 + $0x3ac] ss:$16 sps:$4 sm:$0xff]  }
  0x8d   :  { %1659 = vmatpush1.bf16.msra.mxu0 %v5110_v4  ;;  %1998 = vmatpush1.bf16.msra.mxu1 %v5113_v5  ;;  %v5212_v4 = vld [vmem:[#allocation2 + $0x154] ss:$24 sps:$4 sm:$0xff]   ;;  %v5206_v5 = vld [vmem:[#allocation5 + $0x3a0] ss:$16 sps:$4 sm:$0xff]  }
  0x8e   :  { %1660 = vmatprep.subr.bf16.mxu0 %v5118_v6  ;;  %1999 = vmatprep.subr.bf16.mxu1 %v5121_v7  ;;  %v5209_v6 = vld [vmem:[#allocation5 + $0x3a8] ss:$16 sps:$4 sm:$0xff]   ;;  %v5217_v7 = vld [vmem:[#allocation5 + $0x3c4] ss:$16 sps:$4 sm:$0xff]  }
  0x8f   :  { %1587 = vmatprep.mubr.bf16.mxu0 %v5122_v8  ;;  %1926 = vmatprep.mubr.bf16.mxu1 %v5122_v8  ;;  %v5220_v8 = vld [vmem:[#allocation5 + $0x3cc] ss:$16 sps:$4 sm:$0xff]  }
  0x91   :  { %1661 = vmatpush1.bf16.msra.mxu0 %v5116_v9  ;;  %2000 = vmatpush1.bf16.msra.mxu1 %v5119_v10  ;;  %v5214_v9 = vld [vmem:[#allocation2 + $0x150] ss:$24 sps:$4 sm:$0xff]  }
  0x92   :  { %1662 = vmatprep.subr.bf16.mxu0 %v5127_v11  ;;  %2001 = vmatprep.subr.bf16.mxu1 %v5130_v12  ;;  %v5215_v10 = vld [vmem:[#allocation5 + $0x3c0] ss:$16 sps:$4 sm:$0xff]   ;;  %v5218_v11 = vld [vmem:[#allocation5 + $0x3c8] ss:$16 sps:$4 sm:$0xff]   ;;  %v5223_v12 = vld [vmem:[#allocation5 + $0x3e4] ss:$16 sps:$4 sm:$0xff]  }
  0x94   :  { %1588 = vmatmul.mubr.bf16.gmra.mrb[4].mxu0 %v5124_v13  ;;  %1927 = vmatmul.mubr.bf16.gmra.mrb[4].mxu1 %v5124_v13  ;;  %v5226_v13 = vld [vmem:[#allocation5 + $0x3ec] ss:$16 sps:$4 sm:$0xff]  }
  0x95   :  { %1663 = vmatpush1.bf16.msra.mxu0 %v5125_v14  ;;  %2002 = vmatpush1.bf16.msra.mxu1 %v5128_v15  ;;  %v5229_v14 = vld [vmem:[#allocation2 + $0xc] ss:$24 sps:$4 sm:$0xff]   ;;  %v5221_v15 = vld [vmem:[#allocation5 + $0x3e0] ss:$16 sps:$4 sm:$0xff]  }
  0x96   :  { %1664 = vmatprep.subr.bf16.mxu0 %v5133_v16  ;;  %2003 = vmatprep.subr.bf16.mxu1 %v5136_v17  ;;  %v5224_v16 = vld [vmem:[#allocation5 + $0x3e8] ss:$16 sps:$4 sm:$0xff]   ;;  %v5232_v17 = vld [vmem:[#allocation5 + $0x404] ss:$16 sps:$4 sm:$0xff]  }
  0x97   :  { %1597 = vmatprep.mubr.bf16.mxu0 %v5137_v18  ;;  %1936 = vmatprep.mubr.bf16.mxu1 %v5137_v18  ;;  %v5235_v18 = vld [vmem:[#allocation5 + $0x40c] ss:$16 sps:$4 sm:$0xff]  }
  0x99   :  { %1665 = vmatpush1.bf16.msra.mxu0 %v5131_v19  ;;  %2004 = vmatpush1.bf16.msra.mxu1 %v5134_v20  ;;  %v5227_v19 = vld [vmem:[#allocation2 + $0x8] ss:$24 sps:$4 sm:$0xff]  }
  0x9a   :  { %1666 = vmatprep.subr.bf16.mxu0 %v5142_v21  ;;  %2005 = vmatprep.subr.bf16.mxu1 %v5145_v22  ;;  %v5230_v20 = vld [vmem:[#allocation5 + $0x400] ss:$16 sps:$4 sm:$0xff]   ;;  %v5233_v21 = vld [vmem:[#allocation5 + $0x408] ss:$16 sps:$4 sm:$0xff]   ;;  %v5238_v22 = vld [vmem:[#allocation5 + $0x424] ss:$16 sps:$4 sm:$0xff]  }
  0x9c   :  { %1598 = vmatmul.mubr.bf16.gmra.mrb[8].mxu0 %v5139_v23  ;;  %1937 = vmatmul.mubr.bf16.gmra.mrb[8].mxu1 %v5139_v23  ;;  %v5241_v23 = vld [vmem:[#allocation5 + $0x42c] ss:$16 sps:$4 sm:$0xff]  }
  0x9d   :  { %1667 = vmatpush1.bf16.msra.mxu0 %v5140_v24  ;;  %2006 = vmatpush1.bf16.msra.mxu1 %v5143_v25  ;;  %v5242_v24 = vld [vmem:[#allocation2 + $0x3c] ss:$24 sps:$4 sm:$0xff]   ;;  %v5236_v25 = vld [vmem:[#allocation5 + $0x420] ss:$16 sps:$4 sm:$0xff]  }
  0x9e   :  { %1668 = vmatprep.subr.bf16.mxu0 %v5148_v26  ;;  %2007 = vmatprep.subr.bf16.mxu1 %v5151_v27  ;;  %v5239_v26 = vld [vmem:[#allocation5 + $0x428] ss:$16 sps:$4 sm:$0xff]   ;;  %v5247_v27 = vld [vmem:[#allocation5 + $0x444] ss:$16 sps:$4 sm:$0xff]  }
  0x9f   :  { %1607 = vmatprep.mubr.bf16.mxu0 %v5152_v28  ;;  %1946 = vmatprep.mubr.bf16.mxu1 %v5152_v28  ;;  %v5250_v28 = vld [vmem:[#allocation5 + $0x44c] ss:$16 sps:$4 sm:$0xff]  }
  0xa1   :  { %1669 = vmatpush1.bf16.msra.mxu0 %v5146_v29  ;;  %2008 = vmatpush1.bf16.msra.mxu1 %v5149_v30  ;;  %v5244_v29 = vld [vmem:[#allocation2 + $0x38] ss:$24 sps:$4 sm:$0xff]  }
  0xa2   :  { %1670 = vmatprep.subr.bf16.mxu0 %v5157_v31  ;;  %2009 = vmatprep.subr.bf16.mxu1 %v5160_v32  ;;  %v5245_v30 = vld [vmem:[#allocation5 + $0x440] ss:$16 sps:$4 sm:$0xff]   ;;  %v5248_v31 = vld [vmem:[#allocation5 + $0x448] ss:$16 sps:$4 sm:$0xff]   ;;  %v5253_v32 = vld [vmem:[#allocation5 + $0x464] ss:$16 sps:$4 sm:$0xff]  }
  0xa4   :  { %1608 = vmatmul.mubr.bf16.gmra.mrb[12].mxu0 %v5154_v33  ;;  %1947 = vmatmul.mubr.bf16.gmra.mrb[12].mxu1 %v5154_v33  ;;  %v5256_v33 = vld [vmem:[#allocation5 + $0x46c] ss:$16 sps:$4 sm:$0xff]  }
  0xa5   :  { %1671 = vmatpush1.bf16.msra.mxu0 %v5155_v34  ;;  %2010 = vmatpush1.bf16.msra.mxu1 %v5158_v35  ;;  %v5257_v34 = vld [vmem:[#allocation2 + $0x6c] ss:$24 sps:$4 sm:$0xff]   ;;  %v5251_v35 = vld [vmem:[#allocation5 + $0x460] ss:$16 sps:$4 sm:$0xff]  }
  0xa6   :  { %1672 = vmatprep.subr.bf16.mxu0 %v5163_v36  ;;  %2011 = vmatprep.subr.bf16.mxu1 %v5166_v37  ;;  %v5254_v36 = vld [vmem:[#allocation5 + $0x468] ss:$16 sps:$4 sm:$0xff]   ;;  %v5262_v37 = vld [vmem:[#allocation5 + $0x484] ss:$16 sps:$4 sm:$0xff]  }
  0xa7   :  { %1617 = vmatprep.mubr.bf16.mxu0 %v5167_v38  ;;  %1956 = vmatprep.mubr.bf16.mxu1 %v5167_v38  ;;  %v5265_v38 = vld [vmem:[#allocation5 + $0x48c] ss:$16 sps:$4 sm:$0xff]  }
  0xa9   :  { %1673 = vmatpush1.bf16.msra.mxu0 %v5161_v39  ;;  %2012 = vmatpush1.bf16.msra.mxu1 %v5164_v40  ;;  %v5259_v39 = vld [vmem:[#allocation2 + $0x68] ss:$24 sps:$4 sm:$0xff]  }
  0xaa   :  { %1674 = vmatprep.subr.bf16.mxu0 %v5172_v41  ;;  %2013 = vmatprep.subr.bf16.mxu1 %v5175_v42  ;;  %v5260_v40 = vld [vmem:[#allocation5 + $0x480] ss:$16 sps:$4 sm:$0xff]   ;;  %v5263_v41 = vld [vmem:[#allocation5 + $0x488] ss:$16 sps:$4 sm:$0xff]   ;;  %v5268_v42 = vld [vmem:[#allocation5 + $0x4a4] ss:$16 sps:$4 sm:$0xff]  }
  0xac   :  { %1618 = vmatmul.mubr.bf16.gmra.mrb[16].mxu0 %v5169_v43  ;;  %1957 = vmatmul.mubr.bf16.gmra.mrb[16].mxu1 %v5169_v43  ;;  %v5271_v43 = vld [vmem:[#allocation5 + $0x4ac] ss:$16 sps:$4 sm:$0xff]  }
  0xad   :  { %1675 = vmatpush1.bf16.msra.mxu0 %v5170_v44  ;;  %2014 = vmatpush1.bf16.msra.mxu1 %v5173_v45  ;;  %v5272_v44 = vld [vmem:[#allocation2 + $0x9c] ss:$24 sps:$4 sm:$0xff]   ;;  %v5266_v45 = vld [vmem:[#allocation5 + $0x4a0] ss:$16 sps:$4 sm:$0xff]  }
  0xae   :  { %1676 = vmatprep.subr.bf16.mxu0 %v5178_v46  ;;  %2015 = vmatprep.subr.bf16.mxu1 %v5181_v47  ;;  %v5269_v46 = vld [vmem:[#allocation5 + $0x4a8] ss:$16 sps:$4 sm:$0xff]   ;;  %v5277_v47 = vld [vmem:[#allocation5 + $0x4c4] ss:$16 sps:$4 sm:$0xff]  }
  0xaf   :  { %1627 = vmatprep.mubr.bf16.mxu0 %v5182_v48  ;;  %1966 = vmatprep.mubr.bf16.mxu1 %v5182_v48  ;;  %v5280_v48 = vld [vmem:[#allocation5 + $0x4cc] ss:$16 sps:$4 sm:$0xff]  }
  0xb1   :  { %1677 = vmatpush1.bf16.msra.mxu0 %v5176_v49  ;;  %2016 = vmatpush1.bf16.msra.mxu1 %v5179_v50  ;;  %v5274_v49 = vld [vmem:[#allocation2 + $0x98] ss:$24 sps:$4 sm:$0xff]  }
  0xb2   :  { %1678 = vmatprep.subr.bf16.mxu0 %v5187_v51  ;;  %2017 = vmatprep.subr.bf16.mxu1 %v5190_v52  ;;  %v5275_v50 = vld [vmem:[#allocation5 + $0x4c0] ss:$16 sps:$4 sm:$0xff]   ;;  %v5278_v51 = vld [vmem:[#allocation5 + $0x4c8] ss:$16 sps:$4 sm:$0xff]   ;;  %v5283_v52 = vld [vmem:[#allocation5 + $0x4e4] ss:$16 sps:$4 sm:$0xff]  }
  0xb4   :  { %1628 = vmatmul.mubr.bf16.gmra.mrb[20].mxu0 %v5184_v53  ;;  %1967 = vmatmul.mubr.bf16.gmra.mrb[20].mxu1 %v5184_v53  ;;  %v5286_v53 = vld [vmem:[#allocation5 + $0x4ec] ss:$16 sps:$4 sm:$0xff]  }
  0xb5   :  { %1679 = vmatpush1.bf16.msra.mxu0 %v5185_v54  ;;  %2018 = vmatpush1.bf16.msra.mxu1 %v5188_v55  ;;  %v5287_v54 = vld [vmem:[#allocation2 + $0xcc] ss:$24 sps:$4 sm:$0xff]   ;;  %v5281_v55 = vld [vmem:[#allocation5 + $0x4e0] ss:$16 sps:$4 sm:$0xff]  }
  0xb6   :  { %1680 = vmatprep.subr.bf16.mxu0 %v5193_v56  ;;  %2019 = vmatprep.subr.bf16.mxu1 %v5196_v57  ;;  %v5284_v56 = vld [vmem:[#allocation5 + $0x4e8] ss:$16 sps:$4 sm:$0xff]   ;;  %v5292_v57 = vld [vmem:[#allocation5 + $0x504] ss:$16 sps:$4 sm:$0xff]  }
  0xb7   :  { %1637 = vmatprep.mubr.bf16.mxu0 %v5197_v58  ;;  %1976 = vmatprep.mubr.bf16.mxu1 %v5197_v58  ;;  %v5295_v58 = vld [vmem:[#allocation5 + $0x50c] ss:$16 sps:$4 sm:$0xff]  }
  0xb9   :  { %1681 = vmatpush1.bf16.msra.mxu0 %v5191_v59  ;;  %2020 = vmatpush1.bf16.msra.mxu1 %v5194_v60  ;;  %v5289_v59 = vld [vmem:[#allocation2 + $0xc8] ss:$24 sps:$4 sm:$0xff]  }
  0xba   :  { %1682 = vmatprep.subr.bf16.mxu0 %v5202_v61  ;;  %2021 = vmatprep.subr.bf16.mxu1 %v5205_v62  ;;  %v5290_v60 = vld [vmem:[#allocation5 + $0x500] ss:$16 sps:$4 sm:$0xff]   ;;  %v5293_v61 = vld [vmem:[#allocation5 + $0x508] ss:$16 sps:$4 sm:$0xff]   ;;  %v5298_v62 = vld [vmem:[#allocation5 + $0x524] ss:$16 sps:$4 sm:$0xff]  }
  0xbc   :  { %1638 = vmatmul.mubr.bf16.gmra.mrb[24].mxu0 %v5199_v63  ;;  %1977 = vmatmul.mubr.bf16.gmra.mrb[24].mxu1 %v5199_v63  ;;  %v5301_v63 = vld [vmem:[#allocation5 + $0x52c] ss:$16 sps:$4 sm:$0xff]  }
  0xbd   :  { %1683 = vmatpush1.bf16.msra.mxu0 %v5200_v0  ;;  %2022 = vmatpush1.bf16.msra.mxu1 %v5203_v1  ;;  %v5302_v0 = vld [vmem:[#allocation2 + $0xfc] ss:$24 sps:$4 sm:$0xff]   ;;  %v5296_v1 = vld [vmem:[#allocation5 + $0x520] ss:$16 sps:$4 sm:$0xff]  }
  0xbe   :  { %1684 = vmatprep.subr.bf16.mxu0 %v5208_v2  ;;  %2023 = vmatprep.subr.bf16.mxu1 %v5211_v3  ;;  %v5299_v2 = vld [vmem:[#allocation5 + $0x528] ss:$16 sps:$4 sm:$0xff]   ;;  %v5307_v3 = vld [vmem:[#allocation5 + $0x544] ss:$16 sps:$4 sm:$0xff]  }
  0xbf   :  { %1647 = vmatprep.mubr.bf16.mxu0 %v5212_v4  ;;  %1986 = vmatprep.mubr.bf16.mxu1 %v5212_v4  ;;  %v5310_v4 = vld [vmem:[#allocation5 + $0x54c] ss:$16 sps:$4 sm:$0xff]  }
  0xc1   :  { %1685 = vmatpush1.bf16.msra.mxu0 %v5206_v5  ;;  %2024 = vmatpush1.bf16.msra.mxu1 %v5209_v6  ;;  %v5304_v5 = vld [vmem:[#allocation2 + $0xf8] ss:$24 sps:$4 sm:$0xff]  }
  0xc2   :  { %1686 = vmatprep.subr.bf16.mxu0 %v5217_v7  ;;  %2025 = vmatprep.subr.bf16.mxu1 %v5220_v8  ;;  %v5305_v6 = vld [vmem:[#allocation5 + $0x540] ss:$16 sps:$4 sm:$0xff]   ;;  %v5308_v7 = vld [vmem:[#allocation5 + $0x548] ss:$16 sps:$4 sm:$0xff]   ;;  %v5313_v8 = vld [vmem:[#allocation5 + $0x564] ss:$16 sps:$4 sm:$0xff]  }
  0xc4   :  { %1648 = vmatmul.mubr.bf16.gmra.mrb[28].mxu0 %v5214_v9  ;;  %1987 = vmatmul.mubr.bf16.gmra.mrb[28].mxu1 %v5214_v9  ;;  %v5316_v9 = vld [vmem:[#allocation5 + $0x56c] ss:$16 sps:$4 sm:$0xff]  }
  0xc5   :  { %1687 = vmatpush1.bf16.msra.mxu0 %v5215_v10  ;;  %2026 = vmatpush1.bf16.msra.mxu1 %v5218_v11  ;;  %v5317_v10 = vld [vmem:[#allocation2 + $0x12c] ss:$24 sps:$4 sm:$0xff]   ;;  %v5311_v11 = vld [vmem:[#allocation5 + $0x560] ss:$16 sps:$4 sm:$0xff]  }
  0xc6   :  { %1688 = vmatprep.subr.bf16.mxu0 %v5223_v12  ;;  %2027 = vmatprep.subr.bf16.mxu1 %v5226_v13  ;;  %v5314_v12 = vld [vmem:[#allocation5 + $0x568] ss:$16 sps:$4 sm:$0xff]   ;;  %v5322_v13 = vld [vmem:[#allocation5 + $0x584] ss:$16 sps:$4 sm:$0xff]  }
  0xc7   :  { %1690 = vmatprep.mubr.bf16.mxu0 %v5229_v14  ;;  %2029 = vmatprep.mubr.bf16.mxu1 %v5229_v14  ;;  %v5325_v14 = vld [vmem:[#allocation5 + $0x58c] ss:$16 sps:$4 sm:$0xff]  }
  0xc9   :  { %1689 = vmatpush1.bf16.msra.mxu0 %v5221_v15  ;;  %2028 = vmatpush1.bf16.msra.mxu1 %v5224_v16  ;;  %v5319_v15 = vld [vmem:[#allocation2 + $0x128] ss:$24 sps:$4 sm:$0xff]  }
  0xca   :  { %1771 = vmatprep.subr.bf16.mxu0 %v5232_v17  ;;  %2110 = vmatprep.subr.bf16.mxu1 %v5235_v18  ;;  %v5320_v16 = vld [vmem:[#allocation5 + $0x580] ss:$16 sps:$4 sm:$0xff]   ;;  %v5323_v17 = vld [vmem:[#allocation5 + $0x588] ss:$16 sps:$4 sm:$0xff]   ;;  %v5328_v18 = vld [vmem:[#allocation5 + $0x5a4] ss:$16 sps:$4 sm:$0xff]  }
  0xcc   :  { %1691 = vmatmul.mubr.bf16.vlgmr.msra.gmra.mrb[0].mxu0 %v5227_v19  ;;  %2030 = vmatmul.mubr.bf16.vlgmr.msra.gmra.mrb[0].mxu1 %v5227_v19  ;;  %v5331_v19 = vld [vmem:[#allocation5 + $0x5ac] ss:$16 sps:$4 sm:$0xff]  }
  0xcd   :  { %1772 = vmatpush1.bf16.msra.mxu0 %v5230_v20  ;;  %2111 = vmatpush1.bf16.msra.mxu1 %v5233_v21  ;;  %v5332_v20 = vld [vmem:[#allocation2 + $0x15c] ss:$24 sps:$4 sm:$0xff]   ;;  %v5326_v21 = vld [vmem:[#allocation5 + $0x5a0] ss:$16 sps:$4 sm:$0xff]  }
  0xce   :  { %1773 = vmatprep.subr.bf16.mxu0 %v5238_v22  ;;  %2112 = vmatprep.subr.bf16.mxu1 %v5241_v23  ;;  %v5329_v22 = vld [vmem:[#allocation5 + $0x5a8] ss:$16 sps:$4 sm:$0xff]   ;;  %v5337_v23 = vld [vmem:[#allocation5 + $0x5c4] ss:$16 sps:$4 sm:$0xff]  }
  0xcf   :  { %1700 = vmatprep.mubr.bf16.mxu0 %v5242_v24  ;;  %2039 = vmatprep.mubr.bf16.mxu1 %v5242_v24  ;;  %v5340_v24 = vld [vmem:[#allocation5 + $0x5cc] ss:$16 sps:$4 sm:$0xff]  }
  0xd1   :  { %1774 = vmatpush1.bf16.msra.mxu0 %v5236_v25  ;;  %2113 = vmatpush1.bf16.msra.mxu1 %v5239_v26  ;;  %v5334_v25 = vld [vmem:[#allocation2 + $0x158] ss:$24 sps:$4 sm:$0xff]  }
  0xd2   :  { %1775 = vmatprep.subr.bf16.mxu0 %v5247_v27  ;;  %2114 = vmatprep.subr.bf16.mxu1 %v5250_v28  ;;  %v5335_v26 = vld [vmem:[#allocation5 + $0x5c0] ss:$16 sps:$4 sm:$0xff]   ;;  %v5338_v27 = vld [vmem:[#allocation5 + $0x5c8] ss:$16 sps:$4 sm:$0xff]   ;;  %v5343_v28 = vld [vmem:[#allocation5 + $0x5e4] ss:$16 sps:$4 sm:$0xff]  }
  0xd4   :  { %1701 = vmatmul.mubr.bf16.gmra.mrb[4].mxu0 %v5244_v29  ;;  %2040 = vmatmul.mubr.bf16.gmra.mrb[4].mxu1 %v5244_v29  ;;  %v5346_v29 = vld [vmem:[#allocation5 + $0x5ec] ss:$16 sps:$4 sm:$0xff]  }
  0xd5   :  { %1776 = vmatpush1.bf16.msra.mxu0 %v5245_v30  ;;  %2115 = vmatpush1.bf16.msra.mxu1 %v5248_v31  ;;  %v5349_v30 = vld [vmem:[#allocation2 + $0x14] ss:$24 sps:$4 sm:$0xff]   ;;  %v5341_v31 = vld [vmem:[#allocation5 + $0x5e0] ss:$16 sps:$4 sm:$0xff]  }
  0xd6   :  { %1777 = vmatprep.subr.bf16.mxu0 %v5253_v32  ;;  %2116 = vmatprep.subr.bf16.mxu1 %v5256_v33  ;;  %v5344_v32 = vld [vmem:[#allocation5 + $0x5e8] ss:$16 sps:$4 sm:$0xff]   ;;  %v5373_v33 = vld [vmem:[#allocation7 + $0x4] ss:$16 sps:$4 sm:$0xff]  }
  0xd7   :  { %1710 = vmatprep.mubr.bf16.mxu0 %v5257_v34  ;;  %2049 = vmatprep.mubr.bf16.mxu1 %v5257_v34  ;;  %v5376_v34 = vld [vmem:[#allocation7 + $0xc] ss:$16 sps:$4 sm:$0xff]  }
  0xd9   :  { %1778 = vmatpush1.bf16.msra.mxu0 %v5251_v35  ;;  %2117 = vmatpush1.bf16.msra.mxu1 %v5254_v36  ;;  %v5347_v35 = vld [vmem:[#allocation2 + $0x10] ss:$24 sps:$4 sm:$0xff]   ;;  %v5350_v36 = vld [vmem:[#allocation2 + $0x44] ss:$24 sps:$4 sm:$0xff]  }
  0xda   :  { %1779 = vmatprep.subr.bf16.mxu0 %v5262_v37  ;;  %2118 = vmatprep.subr.bf16.mxu1 %v5265_v38  ;;  %v5371_v37 = vld [vmem:[#allocation7] ss:$16 sps:$4 sm:$0xff]   ;;  %v5374_v38 = vld [vmem:[#allocation7 + $0x8] ss:$16 sps:$4 sm:$0xff]  }
  0xdc   :  { %1711 = vmatmul.mubr.bf16.gmra.mrb[8].mxu0 %v5259_v39  ;;  %2050 = vmatmul.mubr.bf16.gmra.mrb[8].mxu1 %v5259_v39  ;;  %v5379_v39 = vld [vmem:[#allocation7 + $0x24] ss:$16 sps:$4 sm:$0xff]  }
  0xdd   :  { %1780 = vmatpush1.bf16.msra.mxu0 %v5260_v40  ;;  %2119 = vmatpush1.bf16.msra.mxu1 %v5263_v41  ;;  %v5382_v40 = vld [vmem:[#allocation7 + $0x2c] ss:$16 sps:$4 sm:$0xff]   ;;  %v5377_v41 = vld [vmem:[#allocation7 + $0x20] ss:$16 sps:$4 sm:$0xff]  }
  0xde   :  { %1781 = vmatprep.subr.bf16.mxu0 %v5268_v42  ;;  %2120 = vmatprep.subr.bf16.mxu1 %v5271_v43  ;;  %v5380_v42 = vld [vmem:[#allocation7 + $0x28] ss:$16 sps:$4 sm:$0xff]  }
  0xdf   :  { %1720 = vmatprep.mubr.bf16.mxu0 %v5272_v44  ;;  %2059 = vmatprep.mubr.bf16.mxu1 %v5272_v44  ;;  %v5352_v43 = vld [vmem:[#allocation2 + $0x40] ss:$24 sps:$4 sm:$0xff]   ;;  %v5385_v44 = vld [vmem:[#allocation7 + $0x44] ss:$16 sps:$4 sm:$0xff]  }
  0xe1   :  { %1782 = vmatpush1.bf16.msra.mxu0 %v5266_v45  ;;  %2121 = vmatpush1.bf16.msra.mxu1 %v5269_v46  ;;  %v5388_v45 = vld [vmem:[#allocation7 + $0x4c] ss:$16 sps:$4 sm:$0xff]  }
  0xe2   :  { %1783 = vmatprep.subr.bf16.mxu0 %v5277_v47  ;;  %2122 = vmatprep.subr.bf16.mxu1 %v5280_v48  ;;  %v5353_v46 = vld [vmem:[#allocation2 + $0x74] ss:$24 sps:$4 sm:$0xff]   ;;  %v5383_v47 = vld [vmem:[#allocation7 + $0x40] ss:$16 sps:$4 sm:$0xff]   ;;  %v5386_v48 = vld [vmem:[#allocation7 + $0x48] ss:$16 sps:$4 sm:$0xff]  }
  0xe4   :  { %1721 = vmatmul.mubr.bf16.gmra.mrb[12].mxu0 %v5274_v49  ;;  %2060 = vmatmul.mubr.bf16.gmra.mrb[12].mxu1 %v5274_v49  ;;  %v5391_v49 = vld [vmem:[#allocation7 + $0x64] ss:$16 sps:$4 sm:$0xff]  }
  0xe5   :  { %1784 = vmatpush1.bf16.msra.mxu0 %v5275_v50  ;;  %2123 = vmatpush1.bf16.msra.mxu1 %v5278_v51  ;;  %v5394_v50 = vld [vmem:[#allocation7 + $0x6c] ss:$16 sps:$4 sm:$0xff]   ;;  %v5389_v51 = vld [vmem:[#allocation7 + $0x60] ss:$16 sps:$4 sm:$0xff]  }
  0xe6   :  { %1785 = vmatprep.subr.bf16.mxu0 %v5283_v52  ;;  %2124 = vmatprep.subr.bf16.mxu1 %v5286_v53  ;;  %v5392_v52 = vld [vmem:[#allocation7 + $0x68] ss:$16 sps:$4 sm:$0xff]   ;;  %v5397_v53 = vld [vmem:[#allocation7 + $0x84] ss:$16 sps:$4 sm:$0xff]  }
  0xe7   :  { %1730 = vmatprep.mubr.bf16.mxu0 %v5287_v54  ;;  %2069 = vmatprep.mubr.bf16.mxu1 %v5287_v54  ;;  %v5400_v54 = vld [vmem:[#allocation7 + $0x8c] ss:$16 sps:$4 sm:$0xff]  }
  0xe9   :  { %1786 = vmatpush1.bf16.msra.mxu0 %v5281_v55  ;;  %2125 = vmatpush1.bf16.msra.mxu1 %v5284_v56  ;;  %v5355_v55 = vld [vmem:[#allocation2 + $0x70] ss:$24 sps:$4 sm:$0xff]   ;;  %v5356_v56 = vld [vmem:[#allocation2 + $0xa4] ss:$24 sps:$4 sm:$0xff]  }
  0xea   :  { %1787 = vmatprep.subr.bf16.mxu0 %v5292_v57  ;;  %2126 = vmatprep.subr.bf16.mxu1 %v5295_v58  ;;  %v5395_v57 = vld [vmem:[#allocation7 + $0x80] ss:$16 sps:$4 sm:$0xff]   ;;  %v5398_v58 = vld [vmem:[#allocation7 + $0x88] ss:$16 sps:$4 sm:$0xff]  }
  0xec   :  { %1731 = vmatmul.mubr.bf16.gmra.mrb[16].mxu0 %v5289_v59  ;;  %2070 = vmatmul.mubr.bf16.gmra.mrb[16].mxu1 %v5289_v59  ;;  %v5403_v59 = vld [vmem:[#allocation7 + $0xa4] ss:$16 sps:$4 sm:$0xff]  }
  0xed   :  { %1788 = vmatpush1.bf16.msra.mxu0 %v5290_v60  ;;  %2127 = vmatpush1.bf16.msra.mxu1 %v5293_v61  ;;  %v5406_v60 = vld [vmem:[#allocation7 + $0xac] ss:$16 sps:$4 sm:$0xff]   ;;  %v5401_v61 = vld [vmem:[#allocation7 + $0xa0] ss:$16 sps:$4 sm:$0xff]  }
  0xee   :  { %1789 = vmatprep.subr.bf16.mxu0 %v5298_v62  ;;  %2128 = vmatprep.subr.bf16.mxu1 %v5301_v63  ;;  %v5404_v62 = vld [vmem:[#allocation7 + $0xa8] ss:$16 sps:$4 sm:$0xff]   ;;  %v5409_v63 = vld [vmem:[#allocation7 + $0xc4] ss:$16 sps:$4 sm:$0xff]  }
  0xef   :  { %1740 = vmatprep.mubr.bf16.mxu0 %v5302_v0  ;;  %2079 = vmatprep.mubr.bf16.mxu1 %v5302_v0  ;;  %v5412_v0 = vld [vmem:[#allocation7 + $0xcc] ss:$16 sps:$4 sm:$0xff]  }
  0xf1   :  { %1790 = vmatpush1.bf16.msra.mxu0 %v5296_v1  ;;  %2129 = vmatpush1.bf16.msra.mxu1 %v5299_v2  ;;  %v5358_v1 = vld [vmem:[#allocation2 + $0xa0] ss:$24 sps:$4 sm:$0xff]   ;;  %v5359_v2 = vld [vmem:[#allocation2 + $0xd4] ss:$24 sps:$4 sm:$0xff]  }
  0xf2   :  { %1791 = vmatprep.subr.bf16.mxu0 %v5307_v3  ;;  %2130 = vmatprep.subr.bf16.mxu1 %v5310_v4  ;;  %v5407_v3 = vld [vmem:[#allocation7 + $0xc0] ss:$16 sps:$4 sm:$0xff]   ;;  %v5410_v4 = vld [vmem:[#allocation7 + $0xc8] ss:$16 sps:$4 sm:$0xff]  }
  0xf4   :  { %1741 = vmatmul.mubr.bf16.gmra.mrb[20].mxu0 %v5304_v5  ;;  %2080 = vmatmul.mubr.bf16.gmra.mrb[20].mxu1 %v5304_v5  ;;  %v5415_v5 = vld [vmem:[#allocation7 + $0xe4] ss:$16 sps:$4 sm:$0xff]  }
  0xf5   :  { %1792 = vmatpush1.bf16.msra.mxu0 %v5305_v6  ;;  %2131 = vmatpush1.bf16.msra.mxu1 %v5308_v7  ;;  %v5418_v6 = vld [vmem:[#allocation7 + $0xec] ss:$16 sps:$4 sm:$0xff]   ;;  %v5413_v7 = vld [vmem:[#allocation7 + $0xe0] ss:$16 sps:$4 sm:$0xff]  }
  0xf6   :  { %1793 = vmatprep.subr.bf16.mxu0 %v5313_v8  ;;  %2132 = vmatprep.subr.bf16.mxu1 %v5316_v9  ;;  %v5416_v8 = vld [vmem:[#allocation7 + $0xe8] ss:$16 sps:$4 sm:$0xff]   ;;  %v5421_v9 = vld [vmem:[#allocation7 + $0x104] ss:$16 sps:$4 sm:$0xff]  }
  0xf7   :  { %1750 = vmatprep.mubr.bf16.mxu0 %v5317_v10  ;;  %2089 = vmatprep.mubr.bf16.mxu1 %v5317_v10  ;;  %v5424_v10 = vld [vmem:[#allocation7 + $0x10c] ss:$16 sps:$4 sm:$0xff]  }
  0xf9   :  { %1794 = vmatpush1.bf16.msra.mxu0 %v5311_v11  ;;  %2133 = vmatpush1.bf16.msra.mxu1 %v5314_v12  ;;  %v5361_v11 = vld [vmem:[#allocation2 + $0xd0] ss:$24 sps:$4 sm:$0xff]   ;;  %v5362_v12 = vld [vmem:[#allocation2 + $0x104] ss:$24 sps:$4 sm:$0xff]  }
  0xfa   :  { %1795 = vmatprep.subr.bf16.mxu0 %v5322_v13  ;;  %2134 = vmatprep.subr.bf16.mxu1 %v5325_v14  ;;  %v5419_v13 = vld [vmem:[#allocation7 + $0x100] ss:$16 sps:$4 sm:$0xff]   ;;  %v5422_v14 = vld [vmem:[#allocation7 + $0x108] ss:$16 sps:$4 sm:$0xff]  }
  0xfc   :  { %1751 = vmatmul.mubr.bf16.gmra.mrb[24].mxu0 %v5319_v15  ;;  %2090 = vmatmul.mubr.bf16.gmra.mrb[24].mxu1 %v5319_v15  ;;  %v5427_v15 = vld [vmem:[#allocation7 + $0x124] ss:$16 sps:$4 sm:$0xff]  }
  0xfd   :  { %1796 = vmatpush1.bf16.msra.mxu0 %v5320_v16  ;;  %2135 = vmatpush1.bf16.msra.mxu1 %v5323_v17  ;;  %v5430_v16 = vld [vmem:[#allocation7 + $0x12c] ss:$16 sps:$4 sm:$0xff]   ;;  %v5425_v17 = vld [vmem:[#allocation7 + $0x120] ss:$16 sps:$4 sm:$0xff]  }
  0xfe   :  { %1797 = vmatprep.subr.bf16.mxu0 %v5328_v18  ;;  %2136 = vmatprep.subr.bf16.mxu1 %v5331_v19  ;;  %v5428_v18 = vld [vmem:[#allocation7 + $0x128] ss:$16 sps:$4 sm:$0xff]   ;;  %v5433_v19 = vld [vmem:[#allocation7 + $0x144] ss:$16 sps:$4 sm:$0xff]  }
  0xff   :  { %1760 = vmatprep.mubr.bf16.mxu0 %v5332_v20  ;;  %2099 = vmatprep.mubr.bf16.mxu1 %v5332_v20  ;;  %v5436_v20 = vld [vmem:[#allocation7 + $0x14c] ss:$16 sps:$4 sm:$0xff]  }
 0x101   :  { %1798 = vmatpush1.bf16.msra.mxu0 %v5326_v21  ;;  %2137 = vmatpush1.bf16.msra.mxu1 %v5329_v22  ;;  %v5364_v21 = vld [vmem:[#allocation2 + $0x100] ss:$24 sps:$4 sm:$0xff]   ;;  %v5365_v22 = vld [vmem:[#allocation2 + $0x134] ss:$24 sps:$4 sm:$0xff]  }
 0x102   :  { %1799 = vmatprep.subr.bf16.mxu0 %v5337_v23  ;;  %2138 = vmatprep.subr.bf16.mxu1 %v5340_v24  ;;  %v5431_v23 = vld [vmem:[#allocation7 + $0x140] ss:$16 sps:$4 sm:$0xff]   ;;  %v5434_v24 = vld [vmem:[#allocation7 + $0x148] ss:$16 sps:$4 sm:$0xff]  }
 0x104   :  { %1761 = vmatmul.mubr.bf16.gmra.mrb[28].mxu0 %v5334_v25  ;;  %2100 = vmatmul.mubr.bf16.gmra.mrb[28].mxu1 %v5334_v25  ;;  %v5439_v25 = vld [vmem:[#allocation7 + $0x164] ss:$16 sps:$4 sm:$0xff]  }
 0x105   :  { %1800 = vmatpush1.bf16.msra.mxu0 %v5335_v26  ;;  %2139 = vmatpush1.bf16.msra.mxu1 %v5338_v27  ;;  %v5442_v26 = vld [vmem:[#allocation7 + $0x16c] ss:$16 sps:$4 sm:$0xff]   ;;  %v5437_v27 = vld [vmem:[#allocation7 + $0x160] ss:$16 sps:$4 sm:$0xff]  }
 0x106   :  { %1801 = vmatprep.subr.bf16.mxu0 %v5343_v28  ;;  %2140 = vmatprep.subr.bf16.mxu1 %v5346_v29  ;;  %v5440_v28 = vld [vmem:[#allocation7 + $0x168] ss:$16 sps:$4 sm:$0xff]   ;;  %v5445_v29 = vld [vmem:[#allocation7 + $0x184] ss:$16 sps:$4 sm:$0xff]  }
 0x107   :  { %1803 = vmatprep.mubr.bf16.mxu0 %v5349_v30  ;;  %2142 = vmatprep.mubr.bf16.mxu1 %v5349_v30  ;;  %v5448_v30 = vld [vmem:[#allocation7 + $0x18c] ss:$16 sps:$4 sm:$0xff]  }
 0x109   :  { %1802 = vmatpush1.bf16.msra.mxu0 %v5341_v31  ;;  %2141 = vmatpush1.bf16.msra.mxu1 %v5344_v32  ;;  %v5367_v31 = vld [vmem:[#allocation2 + $0x130] ss:$24 sps:$4 sm:$0xff]   ;;  %v5368_v32 = vld [vmem:[#allocation2 + $0x164] ss:$24 sps:$4 sm:$0xff]  }
 0x10a   :  { %3109 = vmatprep.subr.bf16.mxu0 %v5373_v33  ;;  %3335 = vmatprep.subr.bf16.mxu1 %v5376_v34  ;;  %v5443_v33 = vld [vmem:[#allocation7 + $0x180] ss:$16 sps:$4 sm:$0xff]   ;;  %v5446_v34 = vld [vmem:[#allocation7 + $0x188] ss:$16 sps:$4 sm:$0xff]  }
 0x10c   :  { %1804 = vmatmul.mubr.bf16.vlgmr.msra.gmra.mrb[0].mxu0 %v5347_v35  ;;  %2143 = vmatmul.mubr.bf16.vlgmr.msra.gmra.mrb[0].mxu1 %v5347_v35  ;;  %v5451_v35 = vld [vmem:[#allocation7 + $0x1a4] ss:$16 sps:$4 sm:$0xff]  }
 0x10d   :  { %1813 = vmatprep.mubr.bf16.mxu0 %v5350_v36  ;;  %2152 = vmatprep.mubr.bf16.mxu1 %v5350_v36  ;;  %v5454_v36 = vld [vmem:[#allocation7 + $0x1ac] ss:$16 sps:$4 sm:$0xff]  }
 0x10e   :  { %3110 = vmatpush1.bf16.msra.mxu0 %v5371_v37  ;;  %3336 = vmatpush1.bf16.msra.mxu1 %v5374_v38  ;;  %v5449_v37 = vld [vmem:[#allocation7 + $0x1a0] ss:$16 sps:$4 sm:$0xff]   ;;  %v5452_v38 = vld [vmem:[#allocation7 + $0x1a8] ss:$16 sps:$4 sm:$0xff]  }
 0x10f   :  { %3111 = vmatprep.subr.bf16.mxu0 %v5379_v39  ;;  %3337 = vmatprep.subr.bf16.mxu1 %v5382_v40  ;;  %v5370_v39 = vld [vmem:[#allocation2 + $0x160] ss:$24 sps:$4 sm:$0xff]   ;;  %v5457_v40 = vld [vmem:[#allocation7 + $0x1c4] ss:$16 sps:$4 sm:$0xff]  }
 0x112   :  { %3112 = vmatpush1.bf16.msra.mxu0 %v5377_v41  ;;  %3338 = vmatpush1.bf16.msra.mxu1 %v5380_v42  ;;  %v5460_v41 = vld [vmem:[#allocation7 + $0x1cc] ss:$16 sps:$4 sm:$0xff]   ;;  %v5455_v42 = vld [vmem:[#allocation7 + $0x1c0] ss:$16 sps:$4 sm:$0xff]  }
 0x113   :  { %3113 = vmatprep.subr.bf16.mxu0 %v5385_v44  ;;  %3339 = vmatprep.subr.bf16.mxu1 %v5388_v45  ;;  %v5463_v44 = vld [vmem:[#allocation7 + $0x1e4] ss:$16 sps:$4 sm:$0xff]   ;;  %v5466_v45 = vld [vmem:[#allocation7 + $0x1ec] ss:$16 sps:$4 sm:$0xff]  }
 0x114   :  { %1814 = vmatmul.mubr.bf16.gmra.mrb[4].mxu0 %v5352_v43  ;;  %2153 = vmatmul.mubr.bf16.gmra.mrb[4].mxu1 %v5352_v43  ;;  %v5458_v43 = vld [vmem:[#allocation7 + $0x1c8] ss:$16 sps:$4 sm:$0xff]  }
 0x115   :  { %1823 = vmatprep.mubr.bf16.mxu0 %v5353_v46  ;;  %2162 = vmatprep.mubr.bf16.mxu1 %v5353_v46  ;;  %v5461_v46 = vld [vmem:[#allocation7 + $0x1e0] ss:$16 sps:$4 sm:$0xff]  }
 0x116   :  { %3114 = vmatpush1.bf16.msra.mxu0 %v5383_v47  ;;  %3340 = vmatpush1.bf16.msra.mxu1 %v5386_v48  ;;  %v5464_v47 = vld [vmem:[#allocation7 + $0x1e8] ss:$16 sps:$4 sm:$0xff]   ;;  %v5469_v48 = vld [vmem:[#allocation7 + $0x204] ss:$16 sps:$4 sm:$0xff]  }
 0x117   :  { %3115 = vmatprep.subr.bf16.mxu0 %v5391_v49  ;;  %3341 = vmatprep.subr.bf16.mxu1 %v5394_v50  ;;  %v5472_v49 = vld [vmem:[#allocation7 + $0x20c] ss:$16 sps:$4 sm:$0xff]   ;;  %v325_v50 = vlaneseq }
 0x11a   :  { %3116 = vmatpush1.bf16.msra.mxu0 %v5389_v51  ;;  %3342 = vmatpush1.bf16.msra.mxu1 %v5392_v52  ;;  %v5827_v51 = vshrl.u32 %v325_v50, 7 }
 0x11b   :  { %3117 = vmatprep.subr.bf16.mxu0 %v5397_v53  ;;  %3343 = vmatprep.subr.bf16.mxu1 %v5400_v54  ;;  %v323_v54 = vld [vmem:[%s6098_s2] sm:$0xf] }
 0x11c   :  { %1824 = vmatmul.mubr.bf16.gmra.mrb[8].mxu0 %v5355_v55  ;;  %2163 = vmatmul.mubr.bf16.gmra.mrb[8].mxu1 %v5355_v55  ;;  %v327_v52 = vsub.s32 0, %v5827_v51  ;;  %v335_v53 = vsub.s32 2, %v5827_v51  ;;  %v331_v55 = vsub.s32 1, %v5827_v51 }
 0x11d   :  { %1833 = vmatprep.mubr.bf16.mxu0 %v5356_v56  ;;  %2172 = vmatprep.mubr.bf16.mxu1 %v5356_v56  ;;  %v339_v56 = vsub.s32 3, %v5827_v51 }
 0x11e   :  { %3118 = vmatpush1.bf16.msra.mxu0 %v5395_v57  ;;  %3344 = vmatpush1.bf16.msra.mxu1 %v5398_v58  ;;  %v5838_v57 = vrot.slane %v323_v54, %v327_v52  ;;  %v5842_v58 = vrot.slane %v323_v54, %v335_v53 }
 0x11f   :  { %3119 = vmatprep.subr.bf16.mxu0 %v5403_v59  ;;  %3345 = vmatprep.subr.bf16.mxu1 %v5406_v60  ;;  %v5846_v59 = vrot.slane %v323_v54, %v331_v55  ;;  %v5850_v60 = vrot.slane %v323_v54, %v339_v56 }
 0x122   :  { %3120 = vmatpush1.bf16.msra.mxu0 %v5401_v61  ;;  %3346 = vmatpush1.bf16.msra.mxu1 %v5404_v62 }
 0x123   :  { %3121 = vmatprep.subr.bf16.mxu0 %v5409_v63  ;;  %3347 = vmatprep.subr.bf16.mxu1 %v5412_v0 }
 0x124   :  { %1834 = vmatmul.mubr.bf16.gmra.mrb[12].mxu0 %v5358_v1  ;;  %2173 = vmatmul.mubr.bf16.gmra.mrb[12].mxu1 %v5358_v1 }
 0x125   :  { %1843 = vmatprep.mubr.bf16.mxu0 %v5359_v2  ;;  %2182 = vmatprep.mubr.bf16.mxu1 %v5359_v2 }
 0x126   :  { %3122 = vmatpush1.bf16.msra.mxu0 %v5407_v3  ;;  %3348 = vmatpush1.bf16.msra.mxu1 %v5410_v4 }
 0x127   :  { %3123 = vmatprep.subr.bf16.mxu0 %v5415_v5  ;;  %3349 = vmatprep.subr.bf16.mxu1 %v5418_v6 }
 0x12a   :  { %3124 = vmatpush1.bf16.msra.mxu0 %v5413_v7  ;;  %3350 = vmatpush1.bf16.msra.mxu1 %v5416_v8 }
 0x12b   :  { %3125 = vmatprep.subr.bf16.mxu0 %v5421_v9  ;;  %3351 = vmatprep.subr.bf16.mxu1 %v5424_v10 }
 0x12c   :  { %1844 = vmatmul.mubr.bf16.gmra.mrb[16].mxu0 %v5361_v11  ;;  %2183 = vmatmul.mubr.bf16.gmra.mrb[16].mxu1 %v5361_v11 }
 0x12d   :  { %1853 = vmatprep.mubr.bf16.mxu0 %v5362_v12  ;;  %2192 = vmatprep.mubr.bf16.mxu1 %v5362_v12 }
 0x12e   :  { %3126 = vmatpush1.bf16.msra.mxu0 %v5419_v13  ;;  %3352 = vmatpush1.bf16.msra.mxu1 %v5422_v14 }
 0x12f   :  { %3127 = vmatprep.subr.bf16.mxu0 %v5427_v15  ;;  %3353 = vmatprep.subr.bf16.mxu1 %v5430_v16 }
 0x132   :  { %3128 = vmatpush1.bf16.msra.mxu0 %v5425_v17  ;;  %3354 = vmatpush1.bf16.msra.mxu1 %v5428_v18 }
 0x133   :  { %3129 = vmatprep.subr.bf16.mxu0 %v5433_v19  ;;  %3355 = vmatprep.subr.bf16.mxu1 %v5436_v20 }
 0x134   :  { %1854 = vmatmul.mubr.bf16.gmra.mrb[20].mxu0 %v5364_v21  ;;  %2193 = vmatmul.mubr.bf16.gmra.mrb[20].mxu1 %v5364_v21 }
 0x135   :  { %1863 = vmatprep.mubr.bf16.mxu0 %v5365_v22  ;;  %2202 = vmatprep.mubr.bf16.mxu1 %v5365_v22 }
 0x136   :  { %3130 = vmatpush1.bf16.msra.mxu0 %v5431_v23  ;;  %3356 = vmatpush1.bf16.msra.mxu1 %v5434_v24 }
 0x137   :  { %3131 = vmatprep.subr.bf16.mxu0 %v5439_v25  ;;  %3357 = vmatprep.subr.bf16.mxu1 %v5442_v26 }
 0x13a   :  { %3132 = vmatpush1.bf16.msra.mxu0 %v5437_v27  ;;  %3358 = vmatpush1.bf16.msra.mxu1 %v5440_v28  ;;  %v5467_v27 = vld [vmem:[#allocation7 + $0x200] ss:$16 sps:$4 sm:$0xff]   ;;  %v5470_v28 = vld [vmem:[#allocation7 + $0x208] ss:$16 sps:$4 sm:$0xff]  }
 0x13b   :  { %3133 = vmatprep.subr.bf16.mxu0 %v5445_v29  ;;  %3359 = vmatprep.subr.bf16.mxu1 %v5448_v30 }
 0x13c   :  { %1864 = vmatmul.mubr.bf16.gmra.mrb[24].mxu0 %v5367_v31  ;;  %2203 = vmatmul.mubr.bf16.gmra.mrb[24].mxu1 %v5367_v31 }
 0x13d   :  { %1873 = vmatprep.mubr.bf16.mxu0 %v5368_v32  ;;  %2212 = vmatprep.mubr.bf16.mxu1 %v5368_v32 }
 0x13e   :  { %3134 = vmatpush1.bf16.msra.mxu0 %v5443_v33  ;;  %3360 = vmatpush1.bf16.msra.mxu1 %v5446_v34  ;;  %v5475_v33 = vld [vmem:[#allocation7 + $0x224] ss:$16 sps:$4 sm:$0xff]   ;;  %v5478_v34 = vld [vmem:[#allocation7 + $0x22c] ss:$16 sps:$4 sm:$0xff]  }
 0x13f   :  { %3135 = vmatprep.subr.bf16.mxu0 %v5451_v35  ;;  %3361 = vmatprep.subr.bf16.mxu1 %v5454_v36 }
 0x142   :  { %3136 = vmatpush1.bf16.msra.mxu0 %v5449_v37  ;;  %3362 = vmatpush1.bf16.msra.mxu1 %v5452_v38 }
 0x143   :  { %3137 = vmatprep.subr.bf16.mxu0 %v5457_v40  ;;  %3363 = vmatprep.subr.bf16.mxu1 %v5460_v41 }
 0x144   :  { %1874 = vmatmul.mubr.bf16.gmra.mrb[28].mxu0 %v5370_v39  ;;  %2213 = vmatmul.mubr.bf16.gmra.mrb[28].mxu1 %v5370_v39 }
 0x146   :  { %3138 = vmatpush1.bf16.msra.mxu0 %v5455_v42  ;;  %3364 = vmatpush1.bf16.msra.mxu1 %v5458_v43 }
 0x147   :  { %3139 = vmatprep.subr.bf16.mxu0 %v5463_v44  ;;  %3365 = vmatprep.subr.bf16.mxu1 %v5466_v45  ;;  %v5473_v45 = vld [vmem:[#allocation7 + $0x220] ss:$16 sps:$4 sm:$0xff]  }
 0x14a   :  { %3140 = vmatpush1.bf16.msra.mxu0 %v5461_v46  ;;  %3366 = vmatpush1.bf16.msra.mxu1 %v5464_v47  ;;  %v5476_v46 = vld [vmem:[#allocation7 + $0x228] ss:$16 sps:$4 sm:$0xff]   ;;  %v5481_v47 = vld [vmem:[#allocation7 + $0x244] ss:$16 sps:$4 sm:$0xff]  }
 0x14b   :  { %3222 = vmatprep.subr.bf16.mxu0 %v5469_v48  ;;  %3448 = vmatprep.subr.bf16.mxu1 %v5472_v49 }
 0x1df   :  { %v1805_v61 = vpop.f32.mrb[0].mxu0  ;;  %v2144_v62 = vpop.f32.mrb[0].mxu1 }
 0x1e0   :  { %v4678_v63 = vadd.f32 %v1805_v61, %v5838_v57  ;;  %v4710_v0 = vadd.f32 %v2144_v62, %v5842_v58  ;;  %v1807_v1 = vpop.f32.mrb[1].mxu0  ;;  %v2146_v2 = vpop.f32.mrb[1].mxu1  ;;  %v5484_v61 = vld [vmem:[#allocation7 + $0x24c] ss:$16 sps:$4 sm:$0xff]  }
 0x1e1   :  { %v4679_v3 = vadd.f32 %v1807_v1, %v5846_v59  ;;  %v4711_v4 = vadd.f32 %v2146_v2, %v5850_v60  ;;  %v1809_v5 = vpop.f32.mrb[2].mxu0  ;;  %v2148_v6 = vpop.f32.mrb[2].mxu1 }
 0x1e2   :  { %v4680_v7 = vadd.f32 %v1809_v5, %v5838_v57  ;;  %v4712_v8 = vadd.f32 %v2148_v6, %v5842_v58  ;;  %v1811_v9 = vpop.f32.mrb[3].mxu0  ;;  %v2150_v10 = vpop.f32.mrb[3].mxu1  ;;  %v2223_v13 = vmax.f32 %v4678_v63, 0.0  ;;  %v2225_v14 = vmax.f32 %v4710_v0, 0.0 }
 0x1e3   :  { %v4681_v11 = vadd.f32 %v1811_v9, %v5846_v59  ;;  %v4713_v12 = vadd.f32 %v2150_v10, %v5850_v60  ;;  %v2224_v17 = vmax.f32 %v4679_v3, 0.0  ;;  %v2226_v18 = vmax.f32 %v4711_v4, 0.0  ;;  %v5482_v9 = vld [vmem:[#allocation7 + $0x248] ss:$16 sps:$4 sm:$0xff]  }
 0x1e4   :  { %v2227_v15 = vmax.f32 %v4680_v7, 0.0  ;;  %v2229_v16 = vmax.f32 %v4712_v8, 0.0  ;;  %v5479_v8 = vld [vmem:[#allocation7 + $0x240] ss:$16 sps:$4 sm:$0xff]  }
 0x1e5   :  { %v2228_v19 = vmax.f32 %v4681_v11, 0.0  ;;  %v2230_v20 = vmax.f32 %v4713_v12, 0.0 }
 0x1e6   :  { %v2287_v21 = vpack.c.bf16 %v2227_v15, %v2223_v13  ;;  %v5860_v22 = vpack.c.bf16 %v2229_v16, %v2225_v14  ;;  %v5487_v14 = vld [vmem:[#allocation7 + $0x264] ss:$16 sps:$4 sm:$0xff]   ;;  %v5490_v15 = vld [vmem:[#allocation7 + $0x26c] ss:$16 sps:$4 sm:$0xff]  }
 0x1e7   :  { %v2288_v23 = vpack.c.bf16 %v2228_v19, %v2224_v17  ;;  %v5862_v24 = vpack.c.bf16 %v2230_v20, %v2226_v18  ;;  %v1815_v25 = vpop.f32.mrb[4].mxu0  ;;  %v2154_v26 = vpop.f32.mrb[4].mxu1 }
 0x1e8   :  { %v4682_v29 = vadd.f32 %v1815_v25, %v5838_v57  ;;  %v4714_v30 = vadd.f32 %v2154_v26, %v5842_v58  ;;  %v1817_v31 = vpop.f32.mrb[5].mxu0  ;;  %v2156_v32 = vpop.f32.mrb[5].mxu1 }
 0x1e9   :  { %v4683_v35 = vadd.f32 %v1817_v31, %v5846_v59  ;;  %v4715_v36 = vadd.f32 %v2156_v32, %v5850_v60  ;;  %v1819_v37 = vpop.f32.mrb[6].mxu0  ;;  %v2158_v38 = vpop.f32.mrb[6].mxu1  ;;  %3141 = vmatprep.mubr.bf16.mxu0 %v2288_v23  ;;  %3367 = vmatprep.mubr.bf16.mxu1 %v2288_v23 }
 0x1ea   :  { %v4684_v39 = vadd.f32 %v1819_v37, %v5838_v57  ;;  %v4716_v40 = vadd.f32 %v2158_v38, %v5842_v58  ;;  %v1821_v41 = vpop.f32.mrb[7].mxu0  ;;  %v2160_v42 = vpop.f32.mrb[7].mxu1  ;;  %3142 = vmatmul.mubr.bf16.vlgmr.msra.gmra.mrb[32].mxu0 %v2287_v21  ;;  %3368 = vmatmul.mubr.bf16.vlgmr.msra.gmra.mrb[32].mxu1 %v2287_v21  ;;  %v2231_v48 = vmax.f32 %v4682_v29, 0.0  ;;  %v2233_v49 = vmax.f32 %v4714_v30, 0.0  ;;  %v5488_v29 = vld [vmem:[#allocation7 + $0x268] ss:$16 sps:$4 sm:$0xff]  }
 0x1eb   :  { %v4685_v43 = vadd.f32 %v1821_v41, %v5846_v59  ;;  %v4717_v44 = vadd.f32 %v2160_v42, %v5850_v60  ;;  %3223 = vmatpush1.bf16.msra.mxu0 %v5467_v27  ;;  %3449 = vmatpush1.bf16.msra.mxu1 %v5470_v28  ;;  %v2232_v62 = vmax.f32 %v4683_v35, 0.0  ;;  %v2234_v63 = vmax.f32 %v4715_v36, 0.0  ;;  %v5485_v28 = vld [vmem:[#allocation7 + $0x260] ss:$16 sps:$4 sm:$0xff]   ;;  %v5493_v30 = vld [vmem:[#allocation7 + $0x284] ss:$16 sps:$4 sm:$0xff]  }
 0x1ec   :  { %v2235_v50 = vmax.f32 %v4684_v39, 0.0  ;;  %v2237_v54 = vmax.f32 %v4716_v40, 0.0  ;;  %3224 = vmatprep.subr.bf16.mxu0 %v5475_v33  ;;  %3450 = vmatprep.subr.bf16.mxu1 %v5478_v34  ;;  %v5496_v35 = vld [vmem:[#allocation7 + $0x28c] ss:$16 sps:$4 sm:$0xff]  }
 0x1ed   :  { %v2236_v0 = vmax.f32 %v4685_v43, 0.0  ;;  %v2238_v1 = vmax.f32 %v4717_v44, 0.0 }
 0x1ee   :  { %v2291_v2 = vpack.c.bf16 %v2235_v50, %v2231_v48  ;;  %v5872_v3 = vpack.c.bf16 %v2237_v54, %v2233_v49 }
 0x1ef   :  { %v2292_v4 = vpack.c.bf16 %v2236_v0, %v2232_v62  ;;  %v5874_v5 = vpack.c.bf16 %v2238_v1, %v2234_v63  ;;  %v1825_v6 = vpop.f32.mrb[8].mxu0  ;;  %v2164_v7 = vpop.f32.mrb[8].mxu1  ;;  %3225 = vmatpush1.bf16.msra.mxu0 %v5473_v45  ;;  %3451 = vmatpush1.bf16.msra.mxu1 %v5476_v46  ;;  %v5491_v46 = vld [vmem:[#allocation7 + $0x280] ss:$16 sps:$4 sm:$0xff]   ;;  %v5502_v62 = vld [vmem:[#allocation7 + $0x2ac] ss:$16 sps:$4 sm:$0xff]  }
 0x1f0   :  { %v4686_v10 = vadd.f32 %v1825_v6, %v5838_v57  ;;  %v4718_v11 = vadd.f32 %v2164_v7, %v5842_v58  ;;  %v1827_v12 = vpop.f32.mrb[9].mxu0  ;;  %v2166_v13 = vpop.f32.mrb[9].mxu1  ;;  %3226 = vmatprep.subr.bf16.mxu0 %v5481_v47  ;;  %3452 = vmatprep.subr.bf16.mxu1 %v5484_v61  ;;  %v5494_v47 = vld [vmem:[#allocation7 + $0x288] ss:$16 sps:$4 sm:$0xff]   ;;  %v5499_v61 = vld [vmem:[#allocation7 + $0x2a4] ss:$16 sps:$4 sm:$0xff]  }
 0x1f1   :  { %v4687_v16 = vadd.f32 %v1827_v12, %v5846_v59  ;;  %v4719_v17 = vadd.f32 %v2166_v13, %v5850_v60  ;;  %v1829_v18 = vpop.f32.mrb[10].mxu0  ;;  %v2168_v19 = vpop.f32.mrb[10].mxu1  ;;  %3151 = vmatprep.mubr.bf16.mxu0 %v2292_v4  ;;  %3377 = vmatprep.mubr.bf16.mxu1 %v2292_v4  ;;  %v5500_v12 = vld [vmem:[#allocation7 + $0x2a8] ss:$16 sps:$4 sm:$0xff]   ;;  %v5505_v13 = vld [vmem:[#allocation7 + $0x2c4] ss:$16 sps:$4 sm:$0xff]  }
 0x1f2   :  { %v4688_v20 = vadd.f32 %v1829_v18, %v5838_v57  ;;  %v4720_v21 = vadd.f32 %v2168_v19, %v5842_v58  ;;  %v1831_v23 = vpop.f32.mrb[11].mxu0  ;;  %v2170_v25 = vpop.f32.mrb[11].mxu1  ;;  %3152 = vmatmul.mubr.bf16.gmra.mrb[36].mxu0 %v2291_v2  ;;  %3378 = vmatmul.mubr.bf16.gmra.mrb[36].mxu1 %v2291_v2  ;;  %v2239_v31 = vmax.f32 %v4686_v10, 0.0  ;;  %v2241_v32 = vmax.f32 %v4718_v11, 0.0  ;;  %v5497_v11 = vld [vmem:[#allocation7 + $0x2a0] ss:$16 sps:$4 sm:$0xff]  }
 0x1f3   :  { %v4689_v26 = vadd.f32 %v1831_v23, %v5846_v59  ;;  %v4721_v27 = vadd.f32 %v2170_v25, %v5850_v60  ;;  %3227 = vmatpush1.bf16.msra.mxu0 %v5479_v8  ;;  %3453 = vmatpush1.bf16.msra.mxu1 %v5482_v9  ;;  %v2240_v36 = vmax.f32 %v4687_v16, 0.0  ;;  %v2242_v37 = vmax.f32 %v4719_v17, 0.0  ;;  %v5508_v18 = vld [vmem:[#allocation7 + $0x2cc] ss:$16 sps:$4 sm:$0xff]  }
 0x1f4   :  { %v2243_v33 = vmax.f32 %v4688_v20, 0.0  ;;  %v2245_v34 = vmax.f32 %v4720_v21, 0.0  ;;  %3228 = vmatprep.subr.bf16.mxu0 %v5487_v14  ;;  %3454 = vmatprep.subr.bf16.mxu1 %v5490_v15 }
 0x1f5   :  { %v2244_v38 = vmax.f32 %v4689_v26, 0.0  ;;  %v2246_v39 = vmax.f32 %v4721_v27, 0.0 }
 0x1f6   :  { %v2295_v40 = vpack.c.bf16 %v2243_v33, %v2239_v31  ;;  %v5884_v41 = vpack.c.bf16 %v2245_v34, %v2241_v32  ;;  %v5503_v31 = vld [vmem:[#allocation7 + $0x2c0] ss:$16 sps:$4 sm:$0xff]   ;;  %v5506_v32 = vld [vmem:[#allocation7 + $0x2c8] ss:$16 sps:$4 sm:$0xff]  }
 0x1f7   :  { %v2296_v42 = vpack.c.bf16 %v2244_v38, %v2240_v36  ;;  %v5886_v43 = vpack.c.bf16 %v2246_v39, %v2242_v37  ;;  %v1835_v44 = vpop.f32.mrb[12].mxu0  ;;  %v2174_v45 = vpop.f32.mrb[12].mxu1  ;;  %3229 = vmatpush1.bf16.msra.mxu0 %v5485_v28  ;;  %3455 = vmatpush1.bf16.msra.mxu1 %v5488_v29  ;;  %v5511_v37 = vld [vmem:[#allocation7 + $0x2e4] ss:$16 sps:$4 sm:$0xff]   ;;  %v5514_v38 = vld [vmem:[#allocation7 + $0x2ec] ss:$16 sps:$4 sm:$0xff]  }
 0x1f8   :  { %v4690_v48 = vadd.f32 %v1835_v44, %v5838_v57  ;;  %v4722_v49 = vadd.f32 %v2174_v45, %v5842_v58  ;;  %v1837_v50 = vpop.f32.mrb[13].mxu0  ;;  %v2176_v54 = vpop.f32.mrb[13].mxu1  ;;  %3230 = vmatprep.subr.bf16.mxu0 %v5493_v30  ;;  %3456 = vmatprep.subr.bf16.mxu1 %v5496_v35 }
 0x1f9   :  { %v4691_v63 = vadd.f32 %v1837_v50, %v5846_v59  ;;  %v4723_v0 = vadd.f32 %v2176_v54, %v5850_v60  ;;  %v1839_v1 = vpop.f32.mrb[14].mxu0  ;;  %v2178_v2 = vpop.f32.mrb[14].mxu1  ;;  %3161 = vmatprep.mubr.bf16.mxu0 %v2296_v42  ;;  %3387 = vmatprep.mubr.bf16.mxu1 %v2296_v42  ;;  %v5509_v54 = vld [vmem:[#allocation7 + $0x2e0] ss:$16 sps:$4 sm:$0xff]  }
 0x1fa   :  { %v4692_v4 = vadd.f32 %v1839_v1, %v5838_v57  ;;  %v4724_v6 = vadd.f32 %v2178_v2, %v5842_v58  ;;  %v1841_v7 = vpop.f32.mrb[15].mxu0  ;;  %v2180_v8 = vpop.f32.mrb[15].mxu1  ;;  %3162 = vmatmul.mubr.bf16.gmra.mrb[40].mxu0 %v2295_v40  ;;  %3388 = vmatmul.mubr.bf16.gmra.mrb[40].mxu1 %v2295_v40  ;;  %v2247_v14 = vmax.f32 %v4690_v48, 0.0  ;;  %v2249_v15 = vmax.f32 %v4722_v49, 0.0 }
 0x1fb   :  { %v4693_v9 = vadd.f32 %v1841_v7, %v5846_v59  ;;  %v4725_v10 = vadd.f32 %v2180_v8, %v5850_v60  ;;  %3231 = vmatpush1.bf16.msra.mxu0 %v5491_v46  ;;  %3457 = vmatpush1.bf16.msra.mxu1 %v5494_v47  ;;  %v2248_v19 = vmax.f32 %v4691_v63, 0.0  ;;  %v2250_v20 = vmax.f32 %v4723_v0, 0.0 }
 0x1fc   :  { %v2251_v16 = vmax.f32 %v4692_v4, 0.0  ;;  %v2253_v17 = vmax.f32 %v4724_v6, 0.0  ;;  %3232 = vmatprep.subr.bf16.mxu0 %v5499_v61  ;;  %3458 = vmatprep.subr.bf16.mxu1 %v5502_v62  ;;  %v5512_v61 = vld [vmem:[#allocation7 + $0x2e8] ss:$16 sps:$4 sm:$0xff]   ;;  %v5517_v62 = vld [vmem:[#allocation7 + $0x304] ss:$16 sps:$4 sm:$0xff]  }
 0x1fd   :  { %v2252_v21 = vmax.f32 %v4693_v9, 0.0  ;;  %v2254_v23 = vmax.f32 %v4725_v10, 0.0  ;;  %v5520_v4 = vld [vmem:[#allocation7 + $0x30c] ss:$16 sps:$4 sm:$0xff]  }
 0x1fe   :  { %v2299_v25 = vpack.c.bf16 %v2251_v16, %v2247_v14  ;;  %v5896_v26 = vpack.c.bf16 %v2253_v17, %v2249_v15  ;;  %v5515_v16 = vld [vmem:[#allocation7 + $0x300] ss:$16 sps:$4 sm:$0xff]   ;;  %v5518_v17 = vld [vmem:[#allocation7 + $0x308] ss:$16 sps:$4 sm:$0xff]  }
 0x1ff   :  { %v2300_v27 = vpack.c.bf16 %v2252_v21, %v2248_v19  ;;  %v5898_v28 = vpack.c.bf16 %v2254_v23, %v2250_v20  ;;  %v1845_v29 = vpop.f32.mrb[16].mxu0  ;;  %v2184_v30 = vpop.f32.mrb[16].mxu1  ;;  %3233 = vmatpush1.bf16.msra.mxu0 %v5497_v11  ;;  %3459 = vmatpush1.bf16.msra.mxu1 %v5500_v12  ;;  %v5523_v23 = vld [vmem:[#allocation7 + $0x324] ss:$16 sps:$4 sm:$0xff]  }
 0x200   :  { %v4694_v33 = vadd.f32 %v1845_v29, %v5838_v57  ;;  %v4726_v34 = vadd.f32 %v2184_v30, %v5842_v58  ;;  %v1847_v35 = vpop.f32.mrb[17].mxu0  ;;  %v2186_v36 = vpop.f32.mrb[17].mxu1  ;;  %3234 = vmatprep.subr.bf16.mxu0 %v5505_v13  ;;  %3460 = vmatprep.subr.bf16.mxu1 %v5508_v18 }
 0x201   :  { %v4695_v39 = vadd.f32 %v1847_v35, %v5846_v59  ;;  %v4727_v40 = vadd.f32 %v2186_v36, %v5850_v60  ;;  %v1849_v42 = vpop.f32.mrb[18].mxu0  ;;  %v2188_v44 = vpop.f32.mrb[18].mxu1  ;;  %3171 = vmatprep.mubr.bf16.mxu0 %v2300_v27  ;;  %3397 = vmatprep.mubr.bf16.mxu1 %v2300_v27 }
 0x202   :  { %v4696_v45 = vadd.f32 %v1849_v42, %v5838_v57  ;;  %v4728_v46 = vadd.f32 %v2188_v44, %v5842_v58  ;;  %v1851_v47 = vpop.f32.mrb[19].mxu0  ;;  %v2190_v48 = vpop.f32.mrb[19].mxu1  ;;  %3172 = vmatmul.mubr.bf16.gmra.mrb[44].mxu0 %v2299_v25  ;;  %3398 = vmatmul.mubr.bf16.gmra.mrb[44].mxu1 %v2299_v25  ;;  %v2255_v63 = vmax.f32 %v4694_v33, 0.0  ;;  %v2257_v0 = vmax.f32 %v4726_v34, 0.0  ;;  %v5526_v25 = vld [vmem:[#allocation7 + $0x32c] ss:$16 sps:$4 sm:$0xff]  }
 0x203   :  { %v4697_v49 = vadd.f32 %v1851_v47, %v5846_v59  ;;  %v4729_v50 = vadd.f32 %v2190_v48, %v5850_v60  ;;  %3235 = vmatpush1.bf16.msra.mxu0 %v5503_v31  ;;  %3461 = vmatpush1.bf16.msra.mxu1 %v5506_v32  ;;  %v2256_v6 = vmax.f32 %v4695_v39, 0.0  ;;  %v2258_v7 = vmax.f32 %v4727_v40, 0.0  ;;  %v5524_v39 = vld [vmem:[#allocation7 + $0x328] ss:$16 sps:$4 sm:$0xff]   ;;  %v5529_v40 = vld [vmem:[#allocation7 + $0x344] ss:$16 sps:$4 sm:$0xff]  }
 0x204   :  { %v2259_v1 = vmax.f32 %v4696_v45, 0.0  ;;  %v2261_v2 = vmax.f32 %v4728_v46, 0.0  ;;  %3236 = vmatprep.subr.bf16.mxu0 %v5511_v37  ;;  %3462 = vmatprep.subr.bf16.mxu1 %v5514_v38  ;;  %v5521_v38 = vld [vmem:[#allocation7 + $0x320] ss:$16 sps:$4 sm:$0xff]   ;;  %v5532_v47 = vld [vmem:[#allocation7 + $0x34c] ss:$16 sps:$4 sm:$0xff]  }
 0x205   :  { %v2260_v8 = vmax.f32 %v4697_v49, 0.0  ;;  %v2262_v9 = vmax.f32 %v4729_v50, 0.0 }
 0x206   :  { %v2303_v10 = vpack.c.bf16 %v2259_v1, %v2255_v63  ;;  %v5908_v11 = vpack.c.bf16 %v2261_v2, %v2257_v0 }
 0x207   :  { %v2304_v12 = vpack.c.bf16 %v2260_v8, %v2256_v6  ;;  %v5910_v13 = vpack.c.bf16 %v2262_v9, %v2258_v7  ;;  %v1855_v14 = vpop.f32.mrb[20].mxu0  ;;  %v2194_v15 = vpop.f32.mrb[20].mxu1  ;;  %3237 = vmatpush1.bf16.msra.mxu0 %v5509_v54  ;;  %3463 = vmatpush1.bf16.msra.mxu1 %v5512_v61  ;;  %v5530_v6 = vld [vmem:[#allocation7 + $0x348] ss:$16 sps:$4 sm:$0xff]  }
 0x208   :  { %v4698_v18 = vadd.f32 %v1855_v14, %v5838_v57  ;;  %v4730_v19 = vadd.f32 %v2194_v15, %v5842_v58  ;;  %v1857_v20 = vpop.f32.mrb[21].mxu0  ;;  %v2196_v21 = vpop.f32.mrb[21].mxu1  ;;  %3238 = vmatprep.subr.bf16.mxu0 %v5517_v62  ;;  %3464 = vmatprep.subr.bf16.mxu1 %v5520_v4  ;;  %v5527_v4 = vld [vmem:[#allocation7 + $0x340] ss:$16 sps:$4 sm:$0xff]   ;;  %v5538_v14 = vld [vmem:[#allocation7 + $0x36c] ss:$16 sps:$4 sm:$0xff]  }
 0x209   :  { %v4699_v27 = vadd.f32 %v1857_v20, %v5846_v59  ;;  %v4731_v29 = vadd.f32 %v2196_v21, %v5850_v60  ;;  %v1859_v30 = vpop.f32.mrb[22].mxu0  ;;  %v2198_v31 = vpop.f32.mrb[22].mxu1  ;;  %3181 = vmatprep.mubr.bf16.mxu0 %v2304_v12  ;;  %3407 = vmatprep.mubr.bf16.mxu1 %v2304_v12  ;;  %v5535_v12 = vld [vmem:[#allocation7 + $0x364] ss:$16 sps:$4 sm:$0xff]  }
 0x20a   :  { %v4700_v32 = vadd.f32 %v1859_v30, %v5838_v57  ;;  %v4732_v33 = vadd.f32 %v2198_v31, %v5842_v58  ;;  %v1861_v34 = vpop.f32.mrb[23].mxu0  ;;  %v2200_v35 = vpop.f32.mrb[23].mxu1  ;;  %3182 = vmatmul.mubr.bf16.gmra.mrb[48].mxu0 %v2303_v10  ;;  %3408 = vmatmul.mubr.bf16.gmra.mrb[48].mxu1 %v2303_v10  ;;  %v2263_v42 = vmax.f32 %v4698_v18, 0.0  ;;  %v2265_v44 = vmax.f32 %v4730_v19, 0.0  ;;  %v5536_v30 = vld [vmem:[#allocation7 + $0x368] ss:$16 sps:$4 sm:$0xff]  }
 0x20b   :  { %v4701_v36 = vadd.f32 %v1861_v34, %v5846_v59  ;;  %v4733_v37 = vadd.f32 %v2200_v35, %v5850_v60  ;;  %3239 = vmatpush1.bf16.msra.mxu0 %v5515_v16  ;;  %3465 = vmatpush1.bf16.msra.mxu1 %v5518_v17  ;;  %v2264_v48 = vmax.f32 %v4699_v27, 0.0  ;;  %v2266_v49 = vmax.f32 %v4731_v29, 0.0  ;;  %v5533_v29 = vld [vmem:[#allocation7 + $0x360] ss:$16 sps:$4 sm:$0xff]   ;;  %v5541_v31 = vld [vmem:[#allocation7 + $0x384] ss:$16 sps:$4 sm:$0xff]  }
 0x20c   :  { %v2267_v45 = vmax.f32 %v4700_v32, 0.0  ;;  %v2269_v46 = vmax.f32 %v4732_v33, 0.0  ;;  %3240 = vmatprep.subr.bf16.mxu0 %v5523_v23  ;;  %3466 = vmatprep.subr.bf16.mxu1 %v5526_v25 }
 0x20d   :  { %v2268_v50 = vmax.f32 %v4701_v36, 0.0  ;;  %v2270_v54 = vmax.f32 %v4733_v37, 0.0  ;;  %v5544_v36 = vld [vmem:[#allocation7 + $0x38c] ss:$16 sps:$4 sm:$0xff]  }
 0x20e   :  { %v2307_v61 = vpack.c.bf16 %v2267_v45, %v2263_v42  ;;  %v5920_v62 = vpack.c.bf16 %v2269_v46, %v2265_v44 }
 0x20f   :  { %v2308_v63 = vpack.c.bf16 %v2268_v50, %v2264_v48  ;;  %v5922_v0 = vpack.c.bf16 %v2270_v54, %v2266_v49  ;;  %v1865_v1 = vpop.f32.mrb[24].mxu0  ;;  %v2204_v2 = vpop.f32.mrb[24].mxu1  ;;  %3241 = vmatpush1.bf16.msra.mxu0 %v5521_v38  ;;  %3467 = vmatpush1.bf16.msra.mxu1 %v5524_v39  ;;  %v5539_v49 = vld [vmem:[#allocation7 + $0x380] ss:$16 sps:$4 sm:$0xff]   ;;  %v5542_v50 = vld [vmem:[#allocation7 + $0x388] ss:$16 sps:$4 sm:$0xff]  }
 0x210   :  { %v4702_v7 = vadd.f32 %v1865_v1, %v5838_v57  ;;  %v4734_v8 = vadd.f32 %v2204_v2, %v5842_v58  ;;  %v1867_v9 = vpop.f32.mrb[25].mxu0  ;;  %v2206_v10 = vpop.f32.mrb[25].mxu1  ;;  %3242 = vmatprep.subr.bf16.mxu0 %v5529_v40  ;;  %3468 = vmatprep.subr.bf16.mxu1 %v5532_v47  ;;  %v5547_v2 = vld [vmem:[#allocation7 + $0x3a4] ss:$16 sps:$4 sm:$0xff]  }
 0x211   :  { %v4703_v15 = vadd.f32 %v1867_v9, %v5846_v59  ;;  %v4735_v16 = vadd.f32 %v2206_v10, %v5850_v60  ;;  %v1869_v17 = vpop.f32.mrb[26].mxu0  ;;  %v2208_v18 = vpop.f32.mrb[26].mxu1  ;;  %3191 = vmatprep.mubr.bf16.mxu0 %v2308_v63  ;;  %3417 = vmatprep.mubr.bf16.mxu1 %v2308_v63 }
 0x212   :  { %v4704_v19 = vadd.f32 %v1869_v17, %v5838_v57  ;;  %v4736_v20 = vadd.f32 %v2208_v18, %v5842_v58  ;;  %v1871_v21 = vpop.f32.mrb[27].mxu0  ;;  %v2210_v23 = vpop.f32.mrb[27].mxu1  ;;  %3192 = vmatmul.mubr.bf16.gmra.mrb[52].mxu0 %v2307_v61  ;;  %3418 = vmatmul.mubr.bf16.gmra.mrb[52].mxu1 %v2307_v61  ;;  %v2271_v32 = vmax.f32 %v4702_v7, 0.0  ;;  %v2273_v33 = vmax.f32 %v4734_v8, 0.0  ;;  %v5545_v18 = vld [vmem:[#allocation7 + $0x3a0] ss:$16 sps:$4 sm:$0xff]  }
 0x213   :  { %v4705_v25 = vadd.f32 %v1871_v21, %v5846_v59  ;;  %v4737_v27 = vadd.f32 %v2210_v23, %v5850_v60  ;;  %3243 = vmatpush1.bf16.msra.mxu0 %v5527_v4  ;;  %3469 = vmatpush1.bf16.msra.mxu1 %v5530_v6  ;;  %v2272_v37 = vmax.f32 %v4703_v15, 0.0  ;;  %v2274_v38 = vmax.f32 %v4735_v16, 0.0  ;;  %v5550_v4 = vld [vmem:[#allocation7 + $0x3ac] ss:$16 sps:$4 sm:$0xff]  }
 0x214   :  { %v2275_v34 = vmax.f32 %v4704_v19, 0.0  ;;  %v2277_v35 = vmax.f32 %v4736_v20, 0.0  ;;  %3244 = vmatprep.subr.bf16.mxu0 %v5535_v12  ;;  %3470 = vmatprep.subr.bf16.mxu1 %v5538_v14  ;;  %v5548_v19 = vld [vmem:[#allocation7 + $0x3a8] ss:$16 sps:$4 sm:$0xff]   ;;  %v5553_v20 = vld [vmem:[#allocation7 + $0x3c4] ss:$16 sps:$4 sm:$0xff]  }
 0x215   :  { %v2276_v39 = vmax.f32 %v4705_v25, 0.0  ;;  %v2278_v40 = vmax.f32 %v4737_v27, 0.0 }
 0x216   :  { %v2311_v42 = vpack.c.bf16 %v2275_v34, %v2271_v32  ;;  %v5932_v44 = vpack.c.bf16 %v2277_v35, %v2273_v33  ;;  %v5551_v34 = vld [vmem:[#allocation7 + $0x3c0] ss:$16 sps:$4 sm:$0xff]   ;;  %v5554_v35 = vld [vmem:[#allocation7 + $0x3c8] ss:$16 sps:$4 sm:$0xff]  }
 0x217   :  { %v2312_v45 = vpack.c.bf16 %v2276_v39, %v2272_v37  ;;  %v5934_v46 = vpack.c.bf16 %v2278_v40, %v2274_v38  ;;  %v1875_v47 = vpop.f32.mrb[28].mxu0  ;;  %v2214_v48 = vpop.f32.mrb[28].mxu1  ;;  %3245 = vmatpush1.bf16.msra.mxu0 %v5533_v29  ;;  %3471 = vmatpush1.bf16.msra.mxu1 %v5536_v30  ;;  %v5562_v37 = vld [vmem:[#allocation7 + $0x3ec] ss:$16 sps:$4 sm:$0xff]   ;;  %v5557_v38 = vld [vmem:[#allocation7 + $0x3e0] ss:$16 sps:$4 sm:$0xff]  }
 0x218   :  { %v4706_v54 = vadd.f32 %v1875_v47, %v5838_v57  ;;  %v4738_v61 = vadd.f32 %v2214_v48, %v5842_v58  ;;  %v1877_v63 = vpop.f32.mrb[29].mxu0  ;;  %v2216_v1 = vpop.f32.mrb[29].mxu1  ;;  %3246 = vmatprep.subr.bf16.mxu0 %v5541_v31  ;;  %3472 = vmatprep.subr.bf16.mxu1 %v5544_v36  ;;  %v5559_v36 = vld [vmem:[#allocation7 + $0x3e4] ss:$16 sps:$4 sm:$0xff]   ;;  %v5560_v39 = vld [vmem:[#allocation7 + $0x3e8] ss:$16 sps:$4 sm:$0xff]  }
 0x219   :  { %v4707_v6 = vadd.f32 %v1877_v63, %v5846_v59  ;;  %v4739_v7 = vadd.f32 %v2216_v1, %v5850_v60  ;;  %v1879_v8 = vpop.f32.mrb[30].mxu0  ;;  %v2218_v9 = vpop.f32.mrb[30].mxu1  ;;  %3201 = vmatprep.mubr.bf16.mxu0 %v2312_v45  ;;  %3427 = vmatprep.mubr.bf16.mxu1 %v2312_v45  ;;  %v5563_v40 = vld [vmem:[#allocation8 + $0x40] sm:$0xff]   ;;  %v5567_v48 = vld [vmem:[#allocation8 + $0x48] sm:$0xff]   ;;  %v5572_v63 = vld [vmem:[#allocation8 + $0x10] sm:$0xff]  }
 0x21a   :  { %v4708_v10 = vadd.f32 %v1879_v8, %v5838_v57  ;;  %v4740_v12 = vadd.f32 %v2218_v9, %v5842_v58  ;;  %v1881_v14 = vpop.f32.mrb[31].mxu0  ;;  %v2220_v15 = vpop.f32.mrb[31].mxu1  ;;  %3202 = vmatmul.mubr.bf16.gmra.mrb[56].mxu0 %v2311_v42  ;;  %3428 = vmatmul.mubr.bf16.gmra.mrb[56].mxu1 %v2311_v42  ;;  %v2279_v21 = vmax.f32 %v4706_v54, 0.0  ;;  %v2281_v23 = vmax.f32 %v4738_v61, 0.0  ;;  %v5556_v57 = vld [vmem:[#allocation7 + $0x3cc] ss:$16 sps:$4 sm:$0xff]  }
 0x21b   :  { %v4709_v16 = vadd.f32 %v1881_v14, %v5846_v59  ;;  %v4741_v17 = vadd.f32 %v2220_v15, %v5850_v60  ;;  %3247 = vmatpush1.bf16.msra.mxu0 %v5539_v49  ;;  %3473 = vmatpush1.bf16.msra.mxu1 %v5542_v50  ;;  %v2280_v58 = vmax.f32 %v4707_v6, 0.0  ;;  %v2282_v29 = vmax.f32 %v4739_v7, 0.0  ;;  %v5565_v42 = vld [vmem:[#allocation8 + $0xc0] sm:$0xff]   ;;  %v5569_v49 = vld [vmem:[#allocation8 + $0xc8] sm:$0xff]   ;;  %v5571_v54 = vld [vmem:[#allocation8 + $0x50] sm:$0xff]  }
 0x21c   :  { %v2283_v25 = vmax.f32 %v4708_v10, 0.0  ;;  %v2285_v27 = vmax.f32 %v4740_v12, 0.0  ;;  %3248 = vmatprep.subr.bf16.mxu0 %v5547_v2  ;;  %3474 = vmatprep.subr.bf16.mxu1 %v5550_v4  ;;  %v5564_v45 = vld [vmem:[#allocation8] sm:$0xff]   ;;  %v5570_v50 = vld [vmem:[#allocation8 + $0x88] sm:$0xff]   ;;  %v5573_v61 = vld [vmem:[#allocation8 + $0xd0] sm:$0xff]  }
 0x21d   :  { %v2284_v30 = vmax.f32 %v4709_v16, 0.0  ;;  %v2286_v31 = vmax.f32 %v4741_v17, 0.0  ;;  %v5566_v47 = vld [vmem:[#allocation8 + $0x80] sm:$0xff]   ;;  %v5574_v1 = vld [vmem:[#allocation8 + $0x90] sm:$0xff]   ;;  %v5575_v2 = vld [vmem:[#allocation8 + $0x58] sm:$0xff]  }
 0x21e   :  { %v2315_v32 = vpack.c.bf16 %v2283_v25, %v2279_v21  ;;  %v5944_v59 = vpack.c.bf16 %v2285_v27, %v2281_v23  ;;  %v5578_v4 = vld [vmem:[#allocation8 + $0x98] sm:$0xff]   ;;  %v5579_v6 = vld [vmem:[#allocation8 + $0x60] sm:$0xff]   ;;  %v5583_v10 = vld [vmem:[#allocation8 + $0x68] sm:$0xff]  }
 0x21f   :  { %v2316_v60 = vpack.c.bf16 %v2284_v30, %v2280_v58  ;;  %v5946_v33 = vpack.c.bf16 %v2286_v31, %v2282_v29  ;;  %3249 = vmatpush1.bf16.msra.mxu0 %v5545_v18  ;;  %3475 = vmatpush1.bf16.msra.mxu1 %v5548_v19  ;;  %v5581_v7 = vld [vmem:[#allocation8 + $0xe0] sm:$0xff]   ;;  %v5586_v12 = vld [vmem:[#allocation8 + $0xa8] sm:$0xff]   ;;  %v5587_v14 = vld [vmem:[#allocation8 + $0x70] sm:$0xff]  }
 0x220   :  { %3250 = vmatprep.subr.bf16.mxu0 %v5553_v20  ;;  %3476 = vmatprep.subr.bf16.mxu1 %v5556_v57  ;;  %v5580_v8 = vld [vmem:[#allocation8 + $0x20] sm:$0xff]   ;;  %v5589_v15 = vld [vmem:[#allocation8 + $0xf0] sm:$0xff]  }
 0x221   :  { %3211 = vmatprep.mubr.bf16.mxu0 %v2316_v60  ;;  %3437 = vmatprep.mubr.bf16.mxu1 %v2316_v60  ;;  %v5582_v9 = vld [vmem:[#allocation8 + $0xa0] sm:$0xff]   ;;  %v5588_v16 = vld [vmem:[#allocation8 + $0x30] sm:$0xff]  }
 0x222   :  { %3212 = vmatmul.mubr.bf16.gmra.mrb[60].mxu0 %v2315_v32  ;;  %3438 = vmatmul.mubr.bf16.gmra.mrb[60].mxu1 %v2315_v32  ;;  %v5590_v17 = vld [vmem:[#allocation8 + $0xb0] sm:$0xff]  }
 0x223   :  { %3251 = vmatpush1.bf16.msra.mxu0 %v5551_v34  ;;  %3254 = vmatprep.mubr.bf16.mxu0 %v5862_v24 }
 0x224   :  { %3477 = vmatpush1.bf16.msra.mxu1 %v5554_v35  ;;  %3480 = vmatprep.mubr.bf16.mxu1 %v5862_v24  ;;  %v5568_v24 = vld [vmem:[#allocation8 + $0x8] sm:$0xff]  }
 0x225   :  { %3252 = vmatprep.subr.bf16.mxu0 %v5559_v36  ;;  %3478 = vmatprep.subr.bf16.mxu1 %v5562_v37 }
 0x227   :  { %3253 = vmatpush1.bf16.msra.mxu0 %v5557_v38 }
 0x228   :  { %3479 = vmatpush1.bf16.msra.mxu1 %v5560_v39  ;;  %4550 = vmatprep.subr.bf16.mxu0 %v5563_v40 }
 0x229   :  { %4614 = vmatprep.subr.bf16.mxu1 %v5565_v42 }
 0x22a   :  { %3255 = vmatmul.mubr.bf16.vlgmr.msra.gmra.mrb[32].mxu0 %v5860_v22 }
 0x22b   :  { %3481 = vmatmul.mubr.bf16.vlgmr.msra.gmra.mrb[32].mxu1 %v5860_v22  ;;  %3264 = vmatprep.mubr.bf16.mxu0 %v5874_v5  ;;  %v5577_v22 = vld [vmem:[#allocation8 + $0xd8] sm:$0xff]  }
 0x22c   :  { %3490 = vmatprep.mubr.bf16.mxu1 %v5874_v5  ;;  %4551 = vmatpush3.bf16.msra.mxu0 %v5564_v45  ;;  %v5576_v5 = vld [vmem:[#allocation8 + $0x18] sm:$0xff]  }
 0x22d   :  { %4615 = vmatpush3.bf16.msra.mxu1 %v5566_v47  ;;  %4552 = vmatprep.subr.bf16.mxu0 %v5567_v48 }
 0x22e   :  { %4616 = vmatprep.subr.bf16.mxu1 %v5569_v49 }
 0x230   :  { %4553 = vmatpush3.bf16.msra.mxu0 %v5568_v24 }
 0x231   :  { %4617 = vmatpush3.bf16.msra.mxu1 %v5570_v50  ;;  %4554 = vmatprep.subr.bf16.mxu0 %v5571_v54 }
 0x232   :  { %3265 = vmatmul.mubr.bf16.gmra.mrb[36].mxu0 %v5872_v3  ;;  %4618 = vmatprep.subr.bf16.mxu1 %v5573_v61 }
 0x233   :  { %3491 = vmatmul.mubr.bf16.gmra.mrb[36].mxu1 %v5872_v3  ;;  %3274 = vmatprep.mubr.bf16.mxu0 %v5886_v43  ;;  %v5585_v3 = vld [vmem:[#allocation8 + $0xe8] sm:$0xff]  }
 0x234   :  { %3500 = vmatprep.mubr.bf16.mxu1 %v5886_v43  ;;  %4555 = vmatpush3.bf16.msra.mxu0 %v5572_v63  ;;  %v5584_v43 = vld [vmem:[#allocation8 + $0x28] sm:$0xff]  }
 0x235   :  { %4619 = vmatpush3.bf16.msra.mxu1 %v5574_v1  ;;  %4556 = vmatprep.subr.bf16.mxu0 %v5575_v2 }
 0x236   :  { %4620 = vmatprep.subr.bf16.mxu1 %v5577_v22 }
 0x238   :  { %4557 = vmatpush3.bf16.msra.mxu0 %v5576_v5 }
 0x239   :  { %4621 = vmatpush3.bf16.msra.mxu1 %v5578_v4  ;;  %4558 = vmatprep.subr.bf16.mxu0 %v5579_v6 }
 0x23a   :  { %3275 = vmatmul.mubr.bf16.gmra.mrb[40].mxu0 %v5884_v41  ;;  %4622 = vmatprep.subr.bf16.mxu1 %v5581_v7 }
 0x23b   :  { %3501 = vmatmul.mubr.bf16.gmra.mrb[40].mxu1 %v5884_v41  ;;  %3284 = vmatprep.mubr.bf16.mxu0 %v5898_v28  ;;  %v5591_v41 = vld [vmem:[#allocation8 + $0x78] sm:$0xff]  }
 0x23c   :  { %3510 = vmatprep.mubr.bf16.mxu1 %v5898_v28  ;;  %4559 = vmatpush3.bf16.msra.mxu0 %v5580_v8  ;;  %v5592_v28 = vld [vmem:[#allocation8 + $0x38] sm:$0xff]  }
 0x23d   :  { %4623 = vmatpush3.bf16.msra.mxu1 %v5582_v9  ;;  %4560 = vmatprep.subr.bf16.mxu0 %v5583_v10 }
 0x23e   :  { %4624 = vmatprep.subr.bf16.mxu1 %v5585_v3 }
 0x240   :  { %4561 = vmatpush3.bf16.msra.mxu0 %v5584_v43 }
 0x241   :  { %4625 = vmatpush3.bf16.msra.mxu1 %v5586_v12  ;;  %4562 = vmatprep.subr.bf16.mxu0 %v5587_v14 }
 0x242   :  { %3285 = vmatmul.mubr.bf16.gmra.mrb[44].mxu0 %v5896_v26  ;;  %4626 = vmatprep.subr.bf16.mxu1 %v5589_v15 }
 0x243   :  { %3511 = vmatmul.mubr.bf16.gmra.mrb[44].mxu1 %v5896_v26  ;;  %3294 = vmatprep.mubr.bf16.mxu0 %v5910_v13  ;;  %v5593_v26 = vld [vmem:[#allocation8 + $0xf8] sm:$0xff]  }
 0x244   :  { %3520 = vmatprep.mubr.bf16.mxu1 %v5910_v13  ;;  %4563 = vmatpush3.bf16.msra.mxu0 %v5588_v16  ;;  %v2447_v13 = vld [vmem:[%s6100_s4] sm:$0xf] }
 0x245   :  { %4627 = vmatpush3.bf16.msra.mxu1 %v5590_v17  ;;  %4564 = vmatprep.subr.bf16.mxu0 %v5591_v41 }
 0x246   :  { %4628 = vmatprep.subr.bf16.mxu1 %v5593_v26 }
 0x248   :  { %4565 = vmatpush3.bf16.msra.mxu0 %v5592_v28 }
 0x24a   :  { %3295 = vmatmul.mubr.bf16.gmra.mrb[48].mxu0 %v5908_v11 }
 0x24b   :  { %3521 = vmatmul.mubr.bf16.gmra.mrb[48].mxu1 %v5908_v11  ;;  %3304 = vmatprep.mubr.bf16.mxu0 %v5922_v0  ;;  %v5594_v11 = vld [vmem:[#allocation8 + $0xb8] sm:$0xff]  }
 0x24c   :  { %3530 = vmatprep.mubr.bf16.mxu1 %v5922_v0  ;;  %4629 = vmatpush3.bf16.msra.mxu1 %v5594_v11  ;;  %v5989_v0 = vrot.slane %v2447_v13, %v335_v53 }
 0x252   :  { %3305 = vmatmul.mubr.bf16.gmra.mrb[52].mxu0 %v5920_v62 }
 0x253   :  { %3531 = vmatmul.mubr.bf16.gmra.mrb[52].mxu1 %v5920_v62  ;;  %3314 = vmatprep.mubr.bf16.mxu0 %v5934_v46  ;;  %v5985_v62 = vrot.slane %v2447_v13, %v327_v52 }
 0x254   :  { %3540 = vmatprep.mubr.bf16.mxu1 %v5934_v46  ;;  %v5997_v46 = vrot.slane %v2447_v13, %v339_v56 }
 0x25a   :  { %3315 = vmatmul.mubr.bf16.gmra.mrb[56].mxu0 %v5932_v44 }
 0x25b   :  { %3541 = vmatmul.mubr.bf16.gmra.mrb[56].mxu1 %v5932_v44  ;;  %3324 = vmatprep.mubr.bf16.mxu0 %v5946_v33  ;;  %v5993_v44 = vrot.slane %v2447_v13, %v331_v55 }
 0x25c   :  { %3550 = vmatprep.mubr.bf16.mxu1 %v5946_v33 }
 0x262   :  { %3325 = vmatmul.mubr.bf16.gmra.mrb[60].mxu0 %v5944_v59 }
 0x263   :  { %3551 = vmatmul.mubr.bf16.gmra.mrb[60].mxu1 %v5944_v59 }
 0x2fd   :  { %v3256_v18 = vpop.f32.mrb[32].mxu0 }
 0x2fe   :  { %v4742_v19 = vadd.f32 %v3256_v18, %v5985_v62  ;;  %v3482_v20 = vpop.f32.mrb[32].mxu1  ;;  %v3258_v21 = vpop.f32.mrb[33].mxu0 }
 0x2ff   :  { %v4774_v52 = vadd.f32 %v3482_v20, %v5989_v0  ;;  %v4743_v23 = vadd.f32 %v3258_v21, %v5993_v44  ;;  %v3484_v25 = vpop.f32.mrb[33].mxu1  ;;  %v3260_v53 = vpop.f32.mrb[34].mxu0 }
 0x300   :  { %v4775_v27 = vadd.f32 %v3484_v25, %v5997_v46  ;;  %v4744_v55 = vadd.f32 %v3260_v53, %v5985_v62  ;;  %v3486_v57 = vpop.f32.mrb[34].mxu1  ;;  %v3262_v58 = vpop.f32.mrb[35].mxu0  ;;  %v3561_v30 = vmax.f32 %v4742_v19, 0.0 }
 0x301   :  { %v4776_v51 = vadd.f32 %v3486_v57, %v5989_v0  ;;  %v4745_v56 = vadd.f32 %v3262_v58, %v5993_v44  ;;  %v3488_v29 = vpop.f32.mrb[35].mxu1  ;;  %v3563_v59 = vmax.f32 %v4774_v52, 0.0  ;;  %v3562_v60 = vmax.f32 %v4743_v23, 0.0 }
 0x302   :  { %v3565_v31 = vmax.f32 %v4744_v55, 0.0  ;;  %v4777_v32 = vadd.f32 %v3488_v29, %v5997_v46  ;;  %v3564_v35 = vmax.f32 %v4775_v27, 0.0 }
 0x303   :  { %v3567_v33 = vmax.f32 %v4776_v51, 0.0  ;;  %v3566_v34 = vmax.f32 %v4745_v56, 0.0 }
 0x304   :  { %v3625_v36 = vpack.c.bf16 %v3565_v31, %v3561_v30  ;;  %v3568_v37 = vmax.f32 %v4777_v32, 0.0 }
 0x305   :  { %v3627_v38 = vpack.c.bf16 %v3567_v33, %v3563_v59  ;;  %v3626_v39 = vpack.c.bf16 %v3566_v34, %v3562_v60  ;;  %v3266_v40 = vpop.f32.mrb[36].mxu0 }
 0x306   :  { %v3628_v42 = vpack.c.bf16 %v3568_v37, %v3564_v35  ;;  %v4746_v45 = vadd.f32 %v3266_v40, %v5985_v62  ;;  %v3492_v47 = vpop.f32.mrb[36].mxu1  ;;  %v3268_v48 = vpop.f32.mrb[37].mxu0 }
 0x307   :  { %v4778_v49 = vadd.f32 %v3492_v47, %v5989_v0  ;;  %v4747_v24 = vadd.f32 %v3268_v48, %v5993_v44  ;;  %v3494_v50 = vpop.f32.mrb[37].mxu1  ;;  %v3270_v54 = vpop.f32.mrb[38].mxu0  ;;  %3952 = vmatprep.mubr.bf16.mxu0 %v3626_v39 }
 0x308   :  { %v4779_v61 = vadd.f32 %v3494_v50, %v5997_v46  ;;  %v4748_v63 = vadd.f32 %v3270_v54, %v5985_v62  ;;  %v3496_v1 = vpop.f32.mrb[38].mxu1  ;;  %4049 = vmatprep.mubr.bf16.mxu1 %v3628_v42  ;;  %v3272_v2 = vpop.f32.mrb[39].mxu0  ;;  %3953 = vmatmul.mubr.bf16.vlgmr.msra.gmra.mrb[64].mxu0 %v3625_v36  ;;  %v3569_v6 = vmax.f32 %v4746_v45, 0.0 }
 0x309   :  { %v4780_v22 = vadd.f32 %v3496_v1, %v5989_v0  ;;  %v4749_v5 = vadd.f32 %v3272_v2, %v5993_v44  ;;  %v3498_v4 = vpop.f32.mrb[39].mxu1  ;;  %4050 = vmatmul.mubr.bf16.vlgmr.msra.gmra.mrb[64].mxu1 %v3627_v38  ;;  %v3571_v9 = vmax.f32 %v4778_v49, 0.0  ;;  %v3570_v10 = vmax.f32 %v4747_v24, 0.0 }
 0x30a   :  { %v3573_v7 = vmax.f32 %v4748_v63, 0.0  ;;  %v4781_v8 = vadd.f32 %v3498_v4, %v5997_v46  ;;  %v3572_v12 = vmax.f32 %v4779_v61, 0.0 }
 0x30b   :  { %v3575_v3 = vmax.f32 %v4780_v22, 0.0  ;;  %v3574_v43 = vmax.f32 %v4749_v5, 0.0 }
 0x30c   :  { %v3629_v14 = vpack.c.bf16 %v3573_v7, %v3569_v6  ;;  %v3576_v15 = vmax.f32 %v4781_v8, 0.0 }
 0x30d   :  { %v3631_v16 = vpack.c.bf16 %v3575_v3, %v3571_v9  ;;  %v3630_v17 = vpack.c.bf16 %v3574_v43, %v3570_v10  ;;  %v3276_v41 = vpop.f32.mrb[40].mxu0 }
 0x30e   :  { %v3632_v26 = vpack.c.bf16 %v3576_v15, %v3572_v12  ;;  %v4750_v28 = vadd.f32 %v3276_v41, %v5985_v62  ;;  %v3502_v11 = vpop.f32.mrb[40].mxu1  ;;  %v3278_v13 = vpop.f32.mrb[41].mxu0 }
 0x30f   :  { %v4782_v18 = vadd.f32 %v3502_v11, %v5989_v0  ;;  %v4751_v19 = vadd.f32 %v3278_v13, %v5993_v44  ;;  %v3504_v20 = vpop.f32.mrb[41].mxu1  ;;  %v3280_v21 = vpop.f32.mrb[42].mxu0  ;;  %3960 = vmatprep.mubr.bf16.mxu0 %v3630_v17 }
 0x310   :  { %v4783_v52 = vadd.f32 %v3504_v20, %v5997_v46  ;;  %v4752_v23 = vadd.f32 %v3280_v21, %v5985_v62  ;;  %v3506_v25 = vpop.f32.mrb[42].mxu1  ;;  %4057 = vmatprep.mubr.bf16.mxu1 %v3632_v26  ;;  %v3282_v53 = vpop.f32.mrb[43].mxu0  ;;  %3961 = vmatmul.mubr.bf16.gmra.mrb[68].mxu0 %v3629_v14  ;;  %v3577_v58 = vmax.f32 %v4750_v28, 0.0 }
 0x311   :  { %v4784_v27 = vadd.f32 %v3506_v25, %v5989_v0  ;;  %v4753_v55 = vadd.f32 %v3282_v53, %v5993_v44  ;;  %v3508_v57 = vpop.f32.mrb[43].mxu1  ;;  %4058 = vmatmul.mubr.bf16.gmra.mrb[68].mxu1 %v3631_v16  ;;  %v3579_v29 = vmax.f32 %v4782_v18, 0.0  ;;  %v3578_v30 = vmax.f32 %v4751_v19, 0.0 }
 0x312   :  { %v3581_v51 = vmax.f32 %v4752_v23, 0.0  ;;  %v4785_v56 = vadd.f32 %v3508_v57, %v5997_v46  ;;  %v3580_v59 = vmax.f32 %v4783_v52, 0.0 }
 0x313   :  { %v3583_v31 = vmax.f32 %v4784_v27, 0.0  ;;  %v3582_v32 = vmax.f32 %v4753_v55, 0.0 }
 0x314   :  { %v3633_v60 = vpack.c.bf16 %v3581_v51, %v3577_v58  ;;  %v3584_v33 = vmax.f32 %v4785_v56, 0.0 }
 0x315   :  { %v3635_v34 = vpack.c.bf16 %v3583_v31, %v3579_v29  ;;  %v3634_v35 = vpack.c.bf16 %v3582_v32, %v3578_v30  ;;  %v3286_v36 = vpop.f32.mrb[44].mxu0 }
 0x316   :  { %v3636_v37 = vpack.c.bf16 %v3584_v33, %v3580_v59  ;;  %v4754_v38 = vadd.f32 %v3286_v36, %v5985_v62  ;;  %v3512_v39 = vpop.f32.mrb[44].mxu1  ;;  %v3288_v40 = vpop.f32.mrb[45].mxu0 }
 0x317   :  { %v4786_v42 = vadd.f32 %v3512_v39, %v5989_v0  ;;  %v4755_v45 = vadd.f32 %v3288_v40, %v5993_v44  ;;  %v3514_v47 = vpop.f32.mrb[45].mxu1  ;;  %v3290_v48 = vpop.f32.mrb[46].mxu0  ;;  %3968 = vmatprep.mubr.bf16.mxu0 %v3634_v35 }
 0x318   :  { %v4787_v49 = vadd.f32 %v3514_v47, %v5997_v46  ;;  %v4756_v24 = vadd.f32 %v3290_v48, %v5985_v62  ;;  %v3516_v50 = vpop.f32.mrb[46].mxu1  ;;  %4065 = vmatprep.mubr.bf16.mxu1 %v3636_v37  ;;  %v3292_v54 = vpop.f32.mrb[47].mxu0  ;;  %3969 = vmatmul.mubr.bf16.gmra.mrb[72].mxu0 %v3633_v60  ;;  %v3585_v2 = vmax.f32 %v4754_v38, 0.0 }
 0x319   :  { %v4788_v61 = vadd.f32 %v3516_v50, %v5989_v0  ;;  %v4757_v63 = vadd.f32 %v3292_v54, %v5993_v44  ;;  %v3518_v1 = vpop.f32.mrb[47].mxu1  ;;  %4066 = vmatmul.mubr.bf16.gmra.mrb[72].mxu1 %v3635_v34  ;;  %v3587_v4 = vmax.f32 %v4786_v42, 0.0  ;;  %v3586_v6 = vmax.f32 %v4755_v45, 0.0 }
 0x31a   :  { %v3589_v22 = vmax.f32 %v4756_v24, 0.0  ;;  %v4789_v5 = vadd.f32 %v3518_v1, %v5997_v46  ;;  %v3588_v9 = vmax.f32 %v4787_v49, 0.0 }
 0x31b   :  { %v3591_v7 = vmax.f32 %v4788_v61, 0.0  ;;  %v3590_v8 = vmax.f32 %v4757_v63, 0.0 }
 0x31c   :  { %v3637_v10 = vpack.c.bf16 %v3589_v22, %v3585_v2  ;;  %v3592_v3 = vmax.f32 %v4789_v5, 0.0 }
 0x31d   :  { %v3639_v43 = vpack.c.bf16 %v3591_v7, %v3587_v4  ;;  %v3638_v12 = vpack.c.bf16 %v3590_v8, %v3586_v6  ;;  %v3296_v14 = vpop.f32.mrb[48].mxu0 }
 0x31e   :  { %v3640_v15 = vpack.c.bf16 %v3592_v3, %v3588_v9  ;;  %v4758_v16 = vadd.f32 %v3296_v14, %v5985_v62  ;;  %v3522_v17 = vpop.f32.mrb[48].mxu1  ;;  %v3298_v41 = vpop.f32.mrb[49].mxu0 }
 0x31f   :  { %v4790_v26 = vadd.f32 %v3522_v17, %v5989_v0  ;;  %v4759_v28 = vadd.f32 %v3298_v41, %v5993_v44  ;;  %v3524_v11 = vpop.f32.mrb[49].mxu1  ;;  %v3300_v13 = vpop.f32.mrb[50].mxu0  ;;  %3976 = vmatprep.mubr.bf16.mxu0 %v3638_v12 }
 0x320   :  { %v4791_v18 = vadd.f32 %v3524_v11, %v5997_v46  ;;  %v4760_v19 = vadd.f32 %v3300_v13, %v5985_v62  ;;  %v3526_v20 = vpop.f32.mrb[50].mxu1  ;;  %4073 = vmatprep.mubr.bf16.mxu1 %v3640_v15  ;;  %v3302_v21 = vpop.f32.mrb[51].mxu0  ;;  %3977 = vmatmul.mubr.bf16.gmra.mrb[76].mxu0 %v3637_v10  ;;  %v3593_v53 = vmax.f32 %v4758_v16, 0.0 }
 0x321   :  { %v4792_v52 = vadd.f32 %v3526_v20, %v5989_v0  ;;  %v4761_v23 = vadd.f32 %v3302_v21, %v5993_v44  ;;  %v3528_v25 = vpop.f32.mrb[51].mxu1  ;;  %4074 = vmatmul.mubr.bf16.gmra.mrb[76].mxu1 %v3639_v43  ;;  %v3595_v57 = vmax.f32 %v4790_v26, 0.0  ;;  %v3594_v58 = vmax.f32 %v4759_v28, 0.0 }
 0x322   :  { %v3597_v27 = vmax.f32 %v4760_v19, 0.0  ;;  %v4793_v55 = vadd.f32 %v3528_v25, %v5997_v46  ;;  %v3596_v29 = vmax.f32 %v4791_v18, 0.0 }
 0x323   :  { %v3599_v51 = vmax.f32 %v4792_v52, 0.0  ;;  %v3598_v56 = vmax.f32 %v4761_v23, 0.0 }
 0x324   :  { %v3641_v30 = vpack.c.bf16 %v3597_v27, %v3593_v53  ;;  %v3600_v31 = vmax.f32 %v4793_v55, 0.0 }
 0x325   :  { %v3643_v32 = vpack.c.bf16 %v3599_v51, %v3595_v57  ;;  %v3642_v59 = vpack.c.bf16 %v3598_v56, %v3594_v58  ;;  %v3306_v60 = vpop.f32.mrb[52].mxu0 }
 0x326   :  { %v3644_v33 = vpack.c.bf16 %v3600_v31, %v3596_v29  ;;  %v4762_v34 = vadd.f32 %v3306_v60, %v5985_v62  ;;  %v3532_v35 = vpop.f32.mrb[52].mxu1  ;;  %v3308_v36 = vpop.f32.mrb[53].mxu0 }
 0x327   :  { %v4794_v37 = vadd.f32 %v3532_v35, %v5989_v0  ;;  %v4763_v38 = vadd.f32 %v3308_v36, %v5993_v44  ;;  %v3534_v39 = vpop.f32.mrb[53].mxu1  ;;  %v3310_v40 = vpop.f32.mrb[54].mxu0  ;;  %3984 = vmatprep.mubr.bf16.mxu0 %v3642_v59 }
 0x328   :  { %v4795_v42 = vadd.f32 %v3534_v39, %v5997_v46  ;;  %v4764_v45 = vadd.f32 %v3310_v40, %v5985_v62  ;;  %v3536_v47 = vpop.f32.mrb[54].mxu1  ;;  %4081 = vmatprep.mubr.bf16.mxu1 %v3644_v33  ;;  %v3312_v48 = vpop.f32.mrb[55].mxu0  ;;  %3985 = vmatmul.mubr.bf16.gmra.mrb[80].mxu0 %v3641_v30  ;;  %v3601_v54 = vmax.f32 %v4762_v34, 0.0 }
 0x329   :  { %v4796_v49 = vadd.f32 %v3536_v47, %v5989_v0  ;;  %v4765_v24 = vadd.f32 %v3312_v48, %v5993_v44  ;;  %v3538_v50 = vpop.f32.mrb[55].mxu1  ;;  %4082 = vmatmul.mubr.bf16.gmra.mrb[80].mxu1 %v3643_v32  ;;  %v3603_v1 = vmax.f32 %v4794_v37, 0.0  ;;  %v3602_v2 = vmax.f32 %v4763_v38, 0.0 }
 0x32a   :  { %v3605_v61 = vmax.f32 %v4764_v45, 0.0  ;;  %v4797_v63 = vadd.f32 %v3538_v50, %v5997_v46  ;;  %v3604_v4 = vmax.f32 %v4795_v42, 0.0 }
 0x32b   :  { %v3607_v22 = vmax.f32 %v4796_v49, 0.0  ;;  %v3606_v5 = vmax.f32 %v4765_v24, 0.0 }
 0x32c   :  { %v3645_v6 = vpack.c.bf16 %v3605_v61, %v3601_v54  ;;  %v3608_v7 = vmax.f32 %v4797_v63, 0.0 }
 0x32d   :  { %v3647_v8 = vpack.c.bf16 %v3607_v22, %v3603_v1  ;;  %v3646_v9 = vpack.c.bf16 %v3606_v5, %v3602_v2  ;;  %v3316_v10 = vpop.f32.mrb[56].mxu0 }
 0x32e   :  { %v3648_v3 = vpack.c.bf16 %v3608_v7, %v3604_v4  ;;  %v4766_v43 = vadd.f32 %v3316_v10, %v5985_v62  ;;  %v3542_v12 = vpop.f32.mrb[56].mxu1  ;;  %v3318_v14 = vpop.f32.mrb[57].mxu0 }
 0x32f   :  { %v4798_v15 = vadd.f32 %v3542_v12, %v5989_v0  ;;  %v4767_v16 = vadd.f32 %v3318_v14, %v5993_v44  ;;  %v3544_v17 = vpop.f32.mrb[57].mxu1  ;;  %v3320_v41 = vpop.f32.mrb[58].mxu0  ;;  %3992 = vmatprep.mubr.bf16.mxu0 %v3646_v9 }
 0x330   :  { %v4799_v26 = vadd.f32 %v3544_v17, %v5997_v46  ;;  %v4768_v28 = vadd.f32 %v3320_v41, %v5985_v62  ;;  %v3546_v11 = vpop.f32.mrb[58].mxu1  ;;  %4089 = vmatprep.mubr.bf16.mxu1 %v3648_v3  ;;  %v3322_v13 = vpop.f32.mrb[59].mxu0  ;;  %3993 = vmatmul.mubr.bf16.gmra.mrb[84].mxu0 %v3645_v6  ;;  %v3609_v21 = vmax.f32 %v4766_v43, 0.0 }
 0x331   :  { %v4800_v18 = vadd.f32 %v3546_v11, %v5989_v0  ;;  %v4769_v19 = vadd.f32 %v3322_v13, %v5993_v44  ;;  %v3548_v20 = vpop.f32.mrb[59].mxu1  ;;  %4090 = vmatmul.mubr.bf16.gmra.mrb[84].mxu1 %v3647_v8  ;;  %v3611_v25 = vmax.f32 %v4798_v15, 0.0  ;;  %v3610_v53 = vmax.f32 %v4767_v16, 0.0 }
 0x332   :  { %v3613_v52 = vmax.f32 %v4768_v28, 0.0  ;;  %v4801_v23 = vadd.f32 %v3548_v20, %v5997_v46  ;;  %v3612_v57 = vmax.f32 %v4799_v26, 0.0 }
 0x333   :  { %v3615_v27 = vmax.f32 %v4800_v18, 0.0  ;;  %v3614_v55 = vmax.f32 %v4769_v19, 0.0 }
 0x334   :  { %v3649_v58 = vpack.c.bf16 %v3613_v52, %v3609_v21  ;;  %v3616_v51 = vmax.f32 %v4801_v23, 0.0 }
 0x335   :  { %v3651_v56 = vpack.c.bf16 %v3615_v27, %v3611_v25  ;;  %v3650_v29 = vpack.c.bf16 %v3614_v55, %v3610_v53  ;;  %v3326_v30 = vpop.f32.mrb[60].mxu0 }
 0x336   :  { %v3652_v31 = vpack.c.bf16 %v3616_v51, %v3612_v57  ;;  %v4770_v32 = vadd.f32 %v3326_v30, %v5985_v62  ;;  %v3552_v59 = vpop.f32.mrb[60].mxu1  ;;  %v3328_v60 = vpop.f32.mrb[61].mxu0 }
 0x337   :  { %v4802_v33 = vadd.f32 %v3552_v59, %v5989_v0  ;;  %v4771_v34 = vadd.f32 %v3328_v60, %v5993_v44  ;;  %v3554_v35 = vpop.f32.mrb[61].mxu1  ;;  %v3330_v36 = vpop.f32.mrb[62].mxu0  ;;  %4000 = vmatprep.mubr.bf16.mxu0 %v3650_v29 }
 0x338   :  { %v4803_v37 = vadd.f32 %v3554_v35, %v5997_v46  ;;  %v4772_v38 = vadd.f32 %v3330_v36, %v5985_v62  ;;  %v3556_v39 = vpop.f32.mrb[62].mxu1  ;;  %4097 = vmatprep.mubr.bf16.mxu1 %v3652_v31  ;;  %v3332_v40 = vpop.f32.mrb[63].mxu0  ;;  %4001 = vmatmul.mubr.bf16.gmra.mrb[88].mxu0 %v3649_v58  ;;  %v3617_v48 = vmax.f32 %v4770_v32, 0.0 }
 0x339   :  { %v4804_v42 = vadd.f32 %v3556_v39, %v5989_v0  ;;  %v4773_v45 = vadd.f32 %v3332_v40, %v5993_v44  ;;  %v3558_v47 = vpop.f32.mrb[63].mxu1  ;;  %4098 = vmatmul.mubr.bf16.gmra.mrb[88].mxu1 %v3651_v56  ;;  %v3619_v50 = vmax.f32 %v4802_v33, 0.0  ;;  %v3618_v54 = vmax.f32 %v4771_v34, 0.0 }
 0x33a   :  { %v3621_v49 = vmax.f32 %v4772_v38, 0.0  ;;  %v4805_v24 = vadd.f32 %v3558_v47, %v5997_v46  ;;  %v3620_v1 = vmax.f32 %v4803_v37, 0.0  ;;  %v6066_v46 = vld [vmem:[%s6102_s6] ss:$0 sm:$0xff]  ;;  %s5723_s6 = smov [#allocation10]  }
 0x33b   :  { %v3623_v61 = vmax.f32 %v4804_v42, 0.0  ;;  %v3622_v63 = vmax.f32 %v4773_v45, 0.0  ;;  %s4135_s8 = sshll.u32 %s5723_s6, 4  ;;  %s4136_s8 = int_to_ptr.vmem [resolvable:$true] %s4135_s8 }
 0x33c   :  { %v3653_v62 = vpack.c.bf16 %v3621_v49, %v3617_v48  ;;  %v3624_v2 = vmax.f32 %v4805_v24, 0.0  ;;  %s5683_s9 = scalar_lea.vmem %s4136_s8, 2048  ;;  %p5688_p5 = scmp.lt.s32.totalorder %s4136_s8, %s4136_s8 }
 0x33d   :  { %v3655_v22 = vpack.c.bf16 %v3623_v61, %v3619_v50  ;;  %v3654_v5 = vpack.c.bf16 %v3622_v63, %v3618_v54  ;;  %p5684_p4 = scmp.ne.s32.totalorder %s4136_s8, %s5683_s9  ;;  %p5689_p6 = scmp.lt.s32.totalorder %s5683_s9, %s5683_s9 }
 0x33e   :  { %v3656_v4 = vpack.c.bf16 %v3624_v2, %v3620_v1 }
 0x33f   :  { %4008 = vmatprep.mubr.bf16.mxu0 %v3654_v5  ;;  %p5690_p7 = por %p5689_p6, %p5688_p5 }
 0x340   :  { %4105 = vmatprep.mubr.bf16.mxu1 %v3656_v4  ;;  %4009 = vmatmul.mubr.bf16.gmra.mrb[92].mxu0 %v3653_v62 }
 0x341   :  { %4106 = vmatmul.mubr.bf16.gmra.mrb[92].mxu1 %v3655_v22  ;;  %p5691_p8 = pnand %p5690_p7, %p5684_p4 }
 0x3db   :  { %v4566_v0 = vpop.f32.mrb[64].mxu0 }
 0x3dc   :  { %v4630_v44 = vpop.f32.mrb[64].mxu1  ;;  %v4567_v6 = vpop.f32.mrb[65].mxu0 }
 0x3dd   :  { %v4568_v7 = vadd.f32 %v4567_v6, %v4566_v0  ;;  %v4631_v8 = vpop.f32.mrb[65].mxu1  ;;  %v4569_v9 = vpop.f32.mrb[66].mxu0 }
 0x3de   :  { %v4632_v10 = vadd.f32 %v4631_v8, %v4630_v44  ;;  %v4633_v3 = vpop.f32.mrb[66].mxu1  ;;  %v4570_v43 = vpop.f32.mrb[67].mxu0 }
 0x3df   :  { %v3955_v12 = vadd.f32 %v4568_v7, %v6066_v46  ;;  %v4571_v14 = vadd.f32 %v4570_v43, %v4569_v9  ;;  %v4634_v15 = vpop.f32.mrb[67].mxu1 }
 0x3e0   :  { %v4635_v16 = vadd.f32 %v4634_v15, %v4633_v3 }
 0x3e1   :  { %v4052_v17 = vadd.f32 %v4632_v10, %v3955_v12  ;;  %v3958_v41 = vadd.f32 %v4571_v14, %v6066_v46 }
 0x3e3   :  { %4114 = vst [vmem:[#allocation10] sm:$0xff] %v4052_v17  ;;  %v4055_v26 = vadd.f32 %v4635_v16, %v3958_v41  ;;  %v4572_v28 = vpop.f32.mrb[68].mxu0 }
 0x3e4   :  { %v4636_v11 = vpop.f32.mrb[68].mxu1  ;;  %v4573_v13 = vpop.f32.mrb[69].mxu0 }
 0x3e5   :  { %4115 = vst [vmem:[#allocation10 + $0x8] sm:$0xff] %v4055_v26  ;;  %v4574_v18 = vadd.f32 %v4573_v13, %v4572_v28  ;;  %v4637_v19 = vpop.f32.mrb[69].mxu1  ;;  %v4575_v20 = vpop.f32.mrb[70].mxu0 }
 0x3e6   :  { %v4638_v21 = vadd.f32 %v4637_v19, %v4636_v11  ;;  %v4639_v52 = vpop.f32.mrb[70].mxu1  ;;  %v4576_v23 = vpop.f32.mrb[71].mxu0 }
 0x3e7   :  { %v3963_v25 = vadd.f32 %v4574_v18, %v6066_v46  ;;  %v4577_v53 = vadd.f32 %v4576_v23, %v4575_v20  ;;  %v4640_v27 = vpop.f32.mrb[71].mxu1 }
 0x3e8   :  { %v4641_v55 = vadd.f32 %v4640_v27, %v4639_v52 }
 0x3e9   :  { %v4060_v57 = vadd.f32 %v4638_v21, %v3963_v25  ;;  %v3966_v58 = vadd.f32 %v4577_v53, %v6066_v46 }
 0x3eb   :  { %4116 = vst [vmem:[#allocation10 + $0x10] sm:$0xff] %v4060_v57  ;;  %v4063_v51 = vadd.f32 %v4641_v55, %v3966_v58  ;;  %v4578_v56 = vpop.f32.mrb[72].mxu0 }
 0x3ec   :  { %v4642_v29 = vpop.f32.mrb[72].mxu1  ;;  %v4579_v30 = vpop.f32.mrb[73].mxu0 }
 0x3ed   :  { %4117 = vst [vmem:[#allocation10 + $0x18] sm:$0xff] %v4063_v51  ;;  %v4580_v31 = vadd.f32 %v4579_v30, %v4578_v56  ;;  %v4643_v32 = vpop.f32.mrb[73].mxu1  ;;  %v4581_v59 = vpop.f32.mrb[74].mxu0 }
 0x3ee   :  { %v4644_v60 = vadd.f32 %v4643_v32, %v4642_v29  ;;  %v4645_v33 = vpop.f32.mrb[74].mxu1  ;;  %v4582_v34 = vpop.f32.mrb[75].mxu0 }
 0x3ef   :  { %v3971_v35 = vadd.f32 %v4580_v31, %v6066_v46  ;;  %v4583_v36 = vadd.f32 %v4582_v34, %v4581_v59  ;;  %v4646_v37 = vpop.f32.mrb[75].mxu1 }
 0x3f0   :  { %v4647_v38 = vadd.f32 %v4646_v37, %v4645_v33 }
 0x3f1   :  { %v4068_v39 = vadd.f32 %v4644_v60, %v3971_v35  ;;  %v3974_v40 = vadd.f32 %v4583_v36, %v6066_v46 }
 0x3f3   :  { %4118 = vst [vmem:[#allocation10 + $0x20] sm:$0xff] %v4068_v39  ;;  %v4071_v42 = vadd.f32 %v4647_v38, %v3974_v40  ;;  %v4584_v45 = vpop.f32.mrb[76].mxu0 }
 0x3f4   :  { %v4648_v47 = vpop.f32.mrb[76].mxu1  ;;  %v4585_v48 = vpop.f32.mrb[77].mxu0 }
 0x3f5   :  { %4119 = vst [vmem:[#allocation10 + $0x28] sm:$0xff] %v4071_v42  ;;  %v4586_v49 = vadd.f32 %v4585_v48, %v4584_v45  ;;  %v4649_v24 = vpop.f32.mrb[77].mxu1  ;;  %v4587_v50 = vpop.f32.mrb[78].mxu0 }
 0x3f6   :  { %v4650_v54 = vadd.f32 %v4649_v24, %v4648_v47  ;;  %v4651_v61 = vpop.f32.mrb[78].mxu1  ;;  %v4588_v63 = vpop.f32.mrb[79].mxu0 }
 0x3f7   :  { %v3979_v1 = vadd.f32 %v4586_v49, %v6066_v46  ;;  %v4589_v62 = vadd.f32 %v4588_v63, %v4587_v50  ;;  %v4652_v2 = vpop.f32.mrb[79].mxu1 }
 0x3f8   :  { %v4653_v22 = vadd.f32 %v4652_v2, %v4651_v61 }
 0x3f9   :  { %v4076_v5 = vadd.f32 %v4650_v54, %v3979_v1  ;;  %v3982_v4 = vadd.f32 %v4589_v62, %v6066_v46 }
 0x3fb   :  { %4120 = vst [vmem:[#allocation10 + $0x30] sm:$0xff] %v4076_v5  ;;  %v4079_v0 = vadd.f32 %v4653_v22, %v3982_v4  ;;  %v4590_v44 = vpop.f32.mrb[80].mxu0 }
 0x3fc   :  { %v4654_v6 = vpop.f32.mrb[80].mxu1  ;;  %v4591_v7 = vpop.f32.mrb[81].mxu0 }
 0x3fd   :  { %4121 = vst [vmem:[#allocation10 + $0x38] sm:$0xff] %v4079_v0  ;;  %v4592_v8 = vadd.f32 %v4591_v7, %v4590_v44  ;;  %v4655_v9 = vpop.f32.mrb[81].mxu1  ;;  %v4593_v10 = vpop.f32.mrb[82].mxu0 }
 0x3fe   :  { %v4656_v3 = vadd.f32 %v4655_v9, %v4654_v6  ;;  %v4657_v43 = vpop.f32.mrb[82].mxu1  ;;  %v4594_v12 = vpop.f32.mrb[83].mxu0 }
 0x3ff   :  { %v3987_v14 = vadd.f32 %v4592_v8, %v6066_v46  ;;  %v4595_v15 = vadd.f32 %v4594_v12, %v4593_v10  ;;  %v4658_v16 = vpop.f32.mrb[83].mxu1 }
 0x400   :  { %v4659_v17 = vadd.f32 %v4658_v16, %v4657_v43 }
 0x401   :  { %v4084_v41 = vadd.f32 %v4656_v3, %v3987_v14  ;;  %v3990_v26 = vadd.f32 %v4595_v15, %v6066_v46 }
 0x403   :  { %4122 = vst [vmem:[#allocation10 + $0x40] sm:$0xff] %v4084_v41  ;;  %v4087_v28 = vadd.f32 %v4659_v17, %v3990_v26  ;;  %v4596_v11 = vpop.f32.mrb[84].mxu0 }
 0x404   :  { %v4660_v13 = vpop.f32.mrb[84].mxu1  ;;  %v4597_v18 = vpop.f32.mrb[85].mxu0 }
 0x405   :  { %4123 = vst [vmem:[#allocation10 + $0x48] sm:$0xff] %v4087_v28  ;;  %v4598_v19 = vadd.f32 %v4597_v18, %v4596_v11  ;;  %v4661_v20 = vpop.f32.mrb[85].mxu1  ;;  %v4599_v21 = vpop.f32.mrb[86].mxu0 }
 0x406   :  { %v4662_v52 = vadd.f32 %v4661_v20, %v4660_v13  ;;  %v4663_v23 = vpop.f32.mrb[86].mxu1  ;;  %v4600_v25 = vpop.f32.mrb[87].mxu0 }
 0x407   :  { %v3995_v53 = vadd.f32 %v4598_v19, %v6066_v46  ;;  %v4601_v27 = vadd.f32 %v4600_v25, %v4599_v21  ;;  %v4664_v55 = vpop.f32.mrb[87].mxu1 }
 0x408   :  { %v4665_v57 = vadd.f32 %v4664_v55, %v4663_v23 }
 0x409   :  { %v4092_v58 = vadd.f32 %v4662_v52, %v3995_v53  ;;  %v3998_v51 = vadd.f32 %v4601_v27, %v6066_v46 }
 0x40b   :  { %4124 = vst [vmem:[#allocation10 + $0x50] sm:$0xff] %v4092_v58  ;;  %v4095_v56 = vadd.f32 %v4665_v57, %v3998_v51  ;;  %v4602_v29 = vpop.f32.mrb[88].mxu0 }
 0x40c   :  { %v4666_v30 = vpop.f32.mrb[88].mxu1  ;;  %v4603_v31 = vpop.f32.mrb[89].mxu0 }
 0x40d   :  { %4125 = vst [vmem:[#allocation10 + $0x58] sm:$0xff] %v4095_v56  ;;  %v4604_v32 = vadd.f32 %v4603_v31, %v4602_v29  ;;  %v4667_v59 = vpop.f32.mrb[89].mxu1  ;;  %v4605_v60 = vpop.f32.mrb[90].mxu0 }
 0x40e   :  { %v4668_v33 = vadd.f32 %v4667_v59, %v4666_v30  ;;  %v4669_v34 = vpop.f32.mrb[90].mxu1  ;;  %v4606_v35 = vpop.f32.mrb[91].mxu0 }
 0x40f   :  { %v4003_v36 = vadd.f32 %v4604_v32, %v6066_v46  ;;  %v4607_v37 = vadd.f32 %v4606_v35, %v4605_v60  ;;  %v4670_v38 = vpop.f32.mrb[91].mxu1 }
 0x410   :  { %v4671_v39 = vadd.f32 %v4670_v38, %v4669_v34 }
 0x411   :  { %v4100_v40 = vadd.f32 %v4668_v33, %v4003_v36  ;;  %v4006_v42 = vadd.f32 %v4607_v37, %v6066_v46 }
 0x413   :  { %4126 = vst [vmem:[#allocation10 + $0x60] sm:$0xff] %v4100_v40  ;;  %v4103_v45 = vadd.f32 %v4671_v39, %v4006_v42  ;;  %v4608_v47 = vpop.f32.mrb[92].mxu0 }
 0x414   :  { %v4672_v48 = vpop.f32.mrb[92].mxu1  ;;  %v4609_v49 = vpop.f32.mrb[93].mxu0 }
 0x415   :  { %4127 = vst [vmem:[#allocation10 + $0x68] sm:$0xff] %v4103_v45  ;;  %v4610_v24 = vadd.f32 %v4609_v49, %v4608_v47  ;;  %v4673_v50 = vpop.f32.mrb[93].mxu1  ;;  %v4611_v54 = vpop.f32.mrb[94].mxu0 }
 0x416   :  { %v4674_v61 = vadd.f32 %v4673_v50, %v4672_v48  ;;  %v4675_v63 = vpop.f32.mrb[94].mxu1  ;;  %v4612_v1 = vpop.f32.mrb[95].mxu0 }
 0x417   :  { %v4011_v62 = vadd.f32 %v4610_v24, %v6066_v46  ;;  %v4613_v2 = vadd.f32 %v4612_v1, %v4611_v54  ;;  %v4676_v22 = vpop.f32.mrb[95].mxu1 }
 0x418   :  { %v4677_v5 = vadd.f32 %v4676_v22, %v4675_v63 }
 0x419   :  { %v4108_v4 = vadd.f32 %v4674_v61, %v4011_v62  ;;  %v4014_v0 = vadd.f32 %v4613_v2, %v6066_v46 }
 0x41b   :  { %4128 = vst [vmem:[#allocation10 + $0x70] sm:$0xff] %v4108_v4  ;;  %v4111_v44 = vadd.f32 %v4677_v5, %v4014_v0 }
 0x41d   :  { %4129 = vst [vmem:[#allocation10 + $0x78] sm:$0xff] %v4111_v44 }
 0x41e   :  { %5694 = shalt.err (!%p5691_p8)
}
 0x41f   :  { %s5695_s14 = scalar_lea.hbm %s6103_s7, 2048 }
 0x420   :  { %p5696_p9 = scmp.ne.s32.totalorder %s6103_s7, %s5695_s14  ;;  %p5699_p10 = scmp.lt.u32.totalorder %s5695_s14, %s6103_s7 }
 0x422   :  { %p5701_p11 = pnand %p5699_p10, %p5696_p9 }
 0x424   :  { %5704 = shalt.err (!%p5701_p11)
}
 0x425   :  { %s5724_s16 = smov 128   ;;  %s5725_s19 = smov 8  }
 0x426   :  { %4141 = dma.vmem_to_hbm [thread:$0]  %s4136_s8, 2048, %s6103_s7, [#allocation4], %s5724_s16, %s5724_s16, %s5725_s19  }
 0x427   :  { %5711 = dma.done.wait [#allocation4], 2048  }
 0x428   :  { %5712 = vsyncadd [#allocation4], 4294965248 }
 0x429   :  { %4145 = vsyncpa [#allocation3], 1 }
 0x42a   :  { %4146 = vsyncpa [#allocation6], 1 }
 0x42b   :  { %4147 = vsyncpa [#allocation9], 1 }
 0x42c   :  { %4148 = vsyncpa [#allocation4], 1 }

</bundles_post_ra>
